<compile_context>
chip_gen: v7x
topology: tpu7x:2x2x1
jax: 0.10.0
libtpu: 0.0.40
codegen_flags: <defaults>
</compile_context>

<pallas_src>
import functools

import jax
import jax.numpy as jnp
from jax.experimental import pallas as pl
from jax.experimental.pallas import tpu as pltpu

# ----------------------------- configuration -------------------------------
N = 2              # batch
C_IN = 3           # input image channels
H = W = 16         # spatial size of the heatmaps (small stand-in for 64x64)
NUM_CLASSES = 16   # joints / heatmap channels (num_classes=16 in MyNet)
NUM_STACKS = 2     # num_stacks of the hourglass
HID = 384          # SemGCN hidden dim (384 in MyNet)
NUM_LAYERS = 2     # "block" argument of MyNet
ALPHA = 1000.0     # soft_argmax temperature
OUT_DIM = 3        # 3D output coords
LANE = 128

# SemGCN layer plan: input gconv (2 -> HID), NUM_LAYERS hidden, output gconv (HID -> 3)
GCN_DIMS = [(2, HID, True)] + [(HID, HID, True)] * NUM_LAYERS + [(HID, OUT_DIM, False)]
GCN_RELUS = tuple(d[2] for d in GCN_DIMS)


def _pad_up(x, m):
    return ((x + m - 1) // m) * m


# --------------------------- fused forward kernel ---------------------------
def _fused_forward_kernel(
    x_ref,      # (Cin, HW)        f32, one sample (batch dim squeezed by BlockSpec)
    wstem_ref,  # (S*C, Cin)       f32, resident
    side_ref,   # (N, 4)           f32 in SMEM: [ratio_x, ratio_y, left_top0, left_top1]
    adjd_ref,   # (C, 1)           f32, diag(adj)
    adjo_ref,   # (C, C)           f32, off-diagonal adjacency
    *rest,      # L x (w01, b) refs, then hm_ref (S*C, HW), out_ref (C, 128)
    cin, c, num_stacks, w_dim, h_dim, alpha, fouts, relus,
):
    num_layers = len(fouts)
    gcn_refs = rest[: 2 * num_layers]
    hm_ref = rest[2 * num_layers]
    out_ref = rest[2 * num_layers + 1]

    b_idx = pl.program_id(0)

    # ---- stem heatmap head: 1x1 conv as Cin broadcast-FMAs (VPU, no K=3 MXU pass) ----
    x = x_ref[...]                                     # (Cin, HW)
    wstem = wstem_ref[...]                             # (S*C, Cin)
    hm = wstem[:, 0:1] * x[0:1, :]
    for k in range(1, cin):                            # cin == 3, static
        hm = hm + wstem[:, k:k + 1] * x[k:k + 1, :]
    hm_ref[...] = hm                                   # lane-dense (S*C, HW) store
    hm_last = hm[(num_stacks - 1) * c:, :]             # (C, HW), last stack

    # ---- soft_argmax (D == 1), literal translation of the reference ----
    v = hm_last * alpha
    m = jnp.max(v, axis=-1, keepdims=True)
    e = jnp.exp(v - m)
    denom = jnp.sum(e, axis=-1, keepdims=True)
    idxf = jax.lax.broadcasted_iota(jnp.int32, e.shape, 1).astype(jnp.float32)
    num = jnp.sum(e * idxf, axis=-1, keepdims=True)
    ind = num / denom                                  # E[flat index], (C,1), exact f32 div
    ind_f = jnp.floor(ind)
    # reference (D=1): y = floor(ind) % W ; x = floor(floor(ind)/W) % H ; coords /= 64.0
    kp0 = jnp.mod(ind_f, float(w_dim)) / 64.0
    kp1 = jnp.mod(jnp.floor(ind_f / float(w_dim)), float(h_dim)) / 64.0

    # ---- per-sample keypoint transform (scalars from SMEM) ----
    rx = side_ref[b_idx, 0]
    ry = side_ref[b_idx, 1]
    lt0 = side_ref[b_idx, 2]
    lt1 = side_ref[b_idx, 3]
    kp0 = (kp0 / rx + lt0) * rx                        # same op order as the reference loops
    kp1 = (kp1 / ry + lt1) * ry

    # ---- SemGCN graph-conv stack (per sample, J == C rows) ----
    adjd = adjd_ref[...]                               # (C, 1) row scale
    adjo = adjo_ref[...]                               # (C, C)
    act = None
    for l in range(num_layers):
        w01 = gcn_refs[2 * l][...]                     # (Fin, 2*Fout)
        bias = gcn_refs[2 * l + 1][...]                # (1, Fout) f32
        fout = fouts[l]
        if l == 0:
            # fin == 2: two broadcast-FMAs in f32 instead of a K=2 MXU matmul
            h = kp0 * w01[0:1, :] + kp1 * w01[1:2, :]
        else:
            # bf16 only at the MXU boundary, f32 accumulation
            h = jnp.dot(act.astype(w01.dtype), w01,
                        preferred_element_type=jnp.float32)
        h0 = h[:, :fout]
        h1 = h[:, fout:]
        out = adjd * h0 + jnp.dot(adjo, h1, preferred_element_type=jnp.float32) + bias
        if relus[l]:
            out = jnp.maximum(out, 0.0)
        act = out
    out_ref[...] = act                                 # (C, 128) lane-dense store


# ------------------------------- parameters ---------------------------------
def build_adj(j):
    """Chain skeleton + self loops, row-normalized; split into diag vector / off-diag."""
    a = jnp.eye(j, dtype=jnp.float32)
    idx = jnp.arange(j - 1)
    a = a.at[idx, idx + 1].set(1.0)
    a = a.at[idx + 1, idx].set(1.0)
    a = a / jnp.sum(a, axis=1, keepdims=True)
    adj_d_vec = jnp.diag(a).reshape(j, 1)
    adj_o = a - jnp.diag(jnp.diag(a))
    return adj_d_vec, adj_o


def init_params(key):
    keys = jax.random.split(key, NUM_STACKS + 2 * len(GCN_DIMS))
    ki = iter(keys)
    params = {}
    # heatmap head (hourglass stand-in): one 1x1 conv per stack, stacked row-wise
    stem = [0.1 * jax.random.normal(next(ki), (NUM_CLASSES, C_IN), jnp.float32)
            for _ in range(NUM_STACKS)]
    params["w_stem"] = jnp.concatenate(stem, axis=0)          # (S*C, Cin)

    gcn = []
    for fin, fout, _relu in GCN_DIMS:
        fout_pad = _pad_up(fout, LANE)                        # 3 -> 128, 384 -> 384
        scale = 1.0 / jnp.sqrt(jnp.float32(fin))
        w0 = scale * jax.random.normal(next(ki), (fin, fout), jnp.float32)
        w1 = scale * jax.random.normal(next(ki), (fin, fout), jnp.float32)
        pad = ((0, 0), (0, fout_pad - fout))
        w01 = jnp.concatenate([jnp.pad(w0, pad), jnp.pad(w1, pad)], axis=1)  # (Fin, 2*Fp)
        if fin > 8:
            w01 = w01.astype(jnp.bfloat16)   # feeds MXU directly; fin=2 layer stays f32 (VPU)
        b = jnp.zeros((1, fout_pad), jnp.float32)
        gcn.append((w01, b))
    params["gcn"] = gcn
    params["adj_d_vec"], params["adj_o"] = build_adj(NUM_CLASSES)
    return params


# -------------------------------- forward -----------------------------------
def _mynet_forward(x, left_top, ratio_x, ratio_y, params):
    n, cin, h, w = x.shape
    hw = h * w
    c = NUM_CLASSES
    sc = NUM_STACKS * c

    x_flat = x.reshape(n, cin, hw)
    side = jnp.stack([ratio_x, ratio_y, left_top[0], left_top[1]], axis=1)   # (N, 4)

    gcn_inputs, gcn_specs, fouts, fins = [], [], [], []
    for (w01, b) in params["gcn"]:
        fin, two_fout = w01.shape
        fout = two_fout // 2
        fins.append(fin)
        fouts.append(fout)
        gcn_inputs += [w01, b]
        gcn_specs += [
            pl.BlockSpec((fin, two_fout), lambda i: (0, 0)),   # resident across grid
            pl.BlockSpec((1, fout), lambda i: (0, 0)),
        ]
    out_pad = fouts[-1]                                        # 128

    kernel = functools.partial(
        _fused_forward_kernel,
        cin=cin, c=c, num_stacks=NUM_STACKS, w_dim=w, h_dim=h,
        alpha=ALPHA, fouts=tuple(fouts), relus=GCN_RELUS,
    )

    # advisory cost estimate (helps XLA schedule the surrounding reshape/stack ops)
    flops = n * (2 * sc * cin * hw
                 + sum(2 * c * fi * (2 * fo) + 2 * c * c * fo
                       for fi, fo in zip(fins, fouts)))
    in_bytes = (x_flat.size * 4 + params["w_stem"].size * 4 + side.size * 4
                + params["adj_d_vec"].size * 4 + params["adj_o"].size * 4
                + sum(a.size * a.dtype.itemsize for a in gcn_inputs))
    out_bytes = n * sc * hw * 4 + n * c * out_pad * 4
    cost = pl.CostEstimate(flops=int(flops), transcendentals=int(n * c * hw),
                           bytes_accessed=int(in_bytes + out_bytes))

    hm_out, out3d_pad = pl.pallas_call(
        kernel,
        out_shape=(
            jax.ShapeDtypeStruct((n, sc, hw), jnp.float32),     # both stacks' heatmaps
            jax.ShapeDtypeStruct((n, c, out_pad), jnp.float32), # padded 3D coords
        ),
        grid=(n,),                                              # one sample per grid step
        in_specs=[
            pl.BlockSpec((None, cin, hw), lambda i: (i, 0, 0)),       # x, one sample
            pl.BlockSpec((sc, cin), lambda i: (0, 0)),                # stem weights
            pl.BlockSpec(memory_space=pltpu.MemorySpace.SMEM),        # per-sample scalars
            pl.BlockSpec((c, 1), lambda i: (0, 0)),                   # adjacency diagonal
            pl.BlockSpec((c, c), lambda i: (0, 0)),                   # adjacency off-diag
        ] + gcn_specs,
        out_specs=(
            pl.BlockSpec((None, sc, hw), lambda i: (i, 0, 0)),
            pl.BlockSpec((None, c, out_pad), lambda i: (i, 0, 0)),
        ),
        compiler_params=pltpu.CompilerParams(dimension_semantics=("parallel",)),
        cost_estimate=cost,
    )(x_flat, params["w_stem"], side, params["adj_d_vec"], params["adj_o"], *gcn_inputs)

    heatmaps = [hm_out[:, s * c:(s + 1) * c, :].reshape(n, c, h, w)
                for s in range(NUM_STACKS)]
    out_3d = out3d_pad[:, :, :OUT_DIM]
    return out_3d, heatmaps


mynet_forward = jax.jit(_mynet_forward)


# ---------------------------------- main -------------------------------------
if __name__ == "__main__":
    key = jax.random.PRNGKey(0)
    k_x, k_rx, k_ry, k_lt, k_p = jax.random.split(key, 5)

    x = jax.random.normal(k_x, (N, C_IN, H, W), jnp.float32)
    ratio_x = jax.random.uniform(k_rx, (N,), jnp.float32, 0.5, 2.0)
    ratio_y = jax.random.uniform(k_ry, (N,), jnp.float32, 0.5, 2.0)
    left_top = jax.random.uniform(k_lt, (2, N), jnp.float32, 0.0, 8.0)

    params = init_params(k_p)

    out_3d, heatmaps = mynet_forward(x, left_top, ratio_x, ratio_y, params)
    jax.block_until_ready(out_3d)
    jax.block_until_ready(heatmaps[-1])

    assert out_3d.shape == (N, NUM_CLASSES, 3)
    assert heatmaps[-1].shape == (N, NUM_CLASSES, H, W)
    print("KERNEL_OK")
</pallas_src>

<mosaic_0001>
module attributes {stable_mosaic.version = 11 : i64} {
  func.func @_fused_forward_kernel(%arg0: i32, %arg1: memref<1x3x256xf32, #tpu.memory_space<vmem>>, %arg2: memref<32x3xf32, #tpu.memory_space<vmem>>, %arg3: memref<2x4xf32, #tpu.memory_space<smem>>, %arg4: memref<16x1xf32, #tpu.memory_space<vmem>>, %arg5: memref<16x16xf32, #tpu.memory_space<vmem>>, %arg6: memref<2x768xf32, #tpu.memory_space<vmem>>, %arg7: memref<1x384xf32, #tpu.memory_space<vmem>>, %arg8: memref<384x768xbf16, #tpu.memory_space<vmem>>, %arg9: memref<1x384xf32, #tpu.memory_space<vmem>>, %arg10: memref<384x768xbf16, #tpu.memory_space<vmem>>, %arg11: memref<1x384xf32, #tpu.memory_space<vmem>>, %arg12: memref<384x256xbf16, #tpu.memory_space<vmem>>, %arg13: memref<1x128xf32, #tpu.memory_space<vmem>>, %arg14: memref<1x32x256xf32, #tpu.memory_space<vmem>>, %arg15: memref<1x16x128xf32, #tpu.memory_space<vmem>>) attributes {dimension_semantics = [#tpu.dimension_semantics<parallel>], iteration_bounds = array<i64: 2>, scalar_prefetch = 0 : i64, scratch_operands = 0 : i64, tpu.core_type = #tpu.core_type<tc>, window_params = [{transform_indices = @transform_0, window_bounds = array<i64: 1, 3, 256>}, {pipeline_mode = #tpu.pipeline_mode<synchronous>, transform_indices = @transform_1, window_bounds = array<i64: 32, 3>}, {transform_indices = @transform_2, window_bounds = array<i64: 2, 4>}, {pipeline_mode = #tpu.pipeline_mode<synchronous>, transform_indices = @transform_3, window_bounds = array<i64: 16, 1>}, {pipeline_mode = #tpu.pipeline_mode<synchronous>, transform_indices = @transform_4, window_bounds = array<i64: 16, 16>}, {pipeline_mode = #tpu.pipeline_mode<synchronous>, transform_indices = @transform_5, window_bounds = array<i64: 2, 768>}, {pipeline_mode = #tpu.pipeline_mode<synchronous>, transform_indices = @transform_6, window_bounds = array<i64: 1, 384>}, {pipeline_mode = #tpu.pipeline_mode<synchronous>, transform_indices = @transform_7, window_bounds = array<i64: 384, 768>}, {pipeline_mode = #tpu.pipeline_mode<synchronous>, transform_indices = @transform_8, window_bounds = array<i64: 1, 384>}, {pipeline_mode = #tpu.pipeline_mode<synchronous>, transform_indices = @transform_9, window_bounds = array<i64: 384, 768>}, {pipeline_mode = #tpu.pipeline_mode<synchronous>, transform_indices = @transform_10, window_bounds = array<i64: 1, 384>}, {pipeline_mode = #tpu.pipeline_mode<synchronous>, transform_indices = @transform_11, window_bounds = array<i64: 384, 256>}, {pipeline_mode = #tpu.pipeline_mode<synchronous>, transform_indices = @transform_12, window_bounds = array<i64: 1, 128>}, {transform_indices = @transform_13, window_bounds = array<i64: 1, 32, 256>}, {transform_indices = @transform_14, window_bounds = array<i64: 1, 16, 128>}]} {
    %c0 = arith.constant 0 : index
    %c0_0 = arith.constant 0 : index
    %c0_1 = arith.constant 0 : index
    %0 = vector.load %arg1[%c0, %c0_0, %c0_1] : memref<1x3x256xf32, #tpu.memory_space<vmem>>, vector<1x3x256xf32>
    %1 = vector.shape_cast %0 : vector<1x3x256xf32> to vector<3x256xf32>
    %c0_2 = arith.constant 0 : index
    %c0_3 = arith.constant 0 : index
    %2 = vector.load %arg2[%c0_2, %c0_3] : memref<32x3xf32, #tpu.memory_space<vmem>>, vector<32x3xf32>
    %3 = vector.extract_strided_slice %2 {offsets = [0, 0], sizes = [32, 1], strides = [1, 1]} : vector<32x3xf32> to vector<32x1xf32>
    %4 = vector.extract_strided_slice %1 {offsets = [0, 0], sizes = [1, 256], strides = [1, 1]} : vector<3x256xf32> to vector<1x256xf32>
    %5 = vector.broadcast %3 : vector<32x1xf32> to vector<32x256xf32>
    %6 = vector.broadcast %4 : vector<1x256xf32> to vector<32x256xf32>
    %7 = arith.mulf %5, %6 : vector<32x256xf32>
    %8 = vector.extract_strided_slice %2 {offsets = [0, 1], sizes = [32, 1], strides = [1, 1]} : vector<32x3xf32> to vector<32x1xf32>
    %9 = vector.extract_strided_slice %1 {offsets = [1, 0], sizes = [1, 256], strides = [1, 1]} : vector<3x256xf32> to vector<1x256xf32>
    %10 = vector.broadcast %8 : vector<32x1xf32> to vector<32x256xf32>
    %11 = vector.broadcast %9 : vector<1x256xf32> to vector<32x256xf32>
    %12 = arith.mulf %10, %11 : vector<32x256xf32>
    %13 = arith.addf %7, %12 : vector<32x256xf32>
    %14 = vector.extract_strided_slice %2 {offsets = [0, 2], sizes = [32, 1], strides = [1, 1]} : vector<32x3xf32> to vector<32x1xf32>
    %15 = vector.extract_strided_slice %1 {offsets = [2, 0], sizes = [1, 256], strides = [1, 1]} : vector<3x256xf32> to vector<1x256xf32>
    %16 = vector.broadcast %14 : vector<32x1xf32> to vector<32x256xf32>
    %17 = vector.broadcast %15 : vector<1x256xf32> to vector<32x256xf32>
    %18 = arith.mulf %16, %17 : vector<32x256xf32>
    %19 = arith.addf %13, %18 : vector<32x256xf32>
    %c0_4 = arith.constant 0 : index
    %c0_5 = arith.constant 0 : index
    %c0_6 = arith.constant 0 : index
    %20 = vector.load %arg14[%c0_4, %c0_5, %c0_6] : memref<1x32x256xf32, #tpu.memory_space<vmem>>, vector<1x32x256xf32>
    %21 = vector.shape_cast %20 : vector<1x32x256xf32> to vector<32x256xf32>
    %22 = vector.shape_cast %19 : vector<32x256xf32> to vector<1x32x256xf32>
    tpu.vector_store %arg14[%c0_4, %c0_5, %c0_6], %22 {strides = array<i32>} : memref<1x32x256xf32, #tpu.memory_space<vmem>>, vector<1x32x256xf32>,
    %23 = vector.extract_strided_slice %19 {offsets = [16, 0], sizes = [16, 256], strides = [1, 1]} : vector<32x256xf32> to vector<16x256xf32>
    %cst = arith.constant 1.000000e+03 : f32
    %24 = vector.broadcast %cst : f32 to vector<16x256xf32>
    %25 = arith.mulf %23, %24 : vector<16x256xf32>
    %cst_7 = arith.constant dense<0xFF800000> : vector<16xf32>
    %26 = vector.multi_reduction <maximumf>, %25, %cst_7 [1] : vector<16x256xf32> to vector<16xf32>
    %27 = vector.shape_cast %26 : vector<16xf32> to vector<16x1xf32>
    %28 = vector.broadcast %27 : vector<16x1xf32> to vector<16x256xf32>
    %29 = arith.subf %25, %28 : vector<16x256xf32>
    %30 = math.exp %29 : vector<16x256xf32>
    %cst_8 = arith.constant dense<0.000000e+00> : vector<16xf32>
    %31 = vector.multi_reduction <add>, %30, %cst_8 [1] : vector<16x256xf32> to vector<16xf32>
    %32 = vector.shape_cast %31 : vector<16xf32> to vector<16x1xf32>
    %33 = tpu.iota {dimensions = array<i32: 1>} : vector<16x256xi32>
    %34 = arith.sitofp %33 : vector<16x256xi32> to vector<16x256xf32>
    %35 = arith.mulf %30, %34 : vector<16x256xf32>
    %cst_9 = arith.constant dense<0.000000e+00> : vector<16xf32>
    %36 = vector.multi_reduction <add>, %35, %cst_9 [1] : vector<16x256xf32> to vector<16xf32>
    %37 = vector.shape_cast %36 : vector<16xf32> to vector<16x1xf32>
    %38 = arith.divf %37, %32 : vector<16x1xf32>
    %39 = math.floor %38 : vector<16x1xf32>
    %cst_10 = arith.constant 1.600000e+01 : f32
    %40 = vector.broadcast %cst_10 : f32 to vector<16x1xf32>
    %41 = arith.remf %39, %40 : vector<16x1xf32>
    %cst_11 = arith.constant 0.000000e+00 : f32
    %42 = vector.broadcast %cst_11 : f32 to vector<16x1xf32>
    %43 = arith.cmpf one, %41, %42 : vector<16x1xf32>
    %cst_12 = arith.constant 0.000000e+00 : f32
    %44 = vector.broadcast %cst_12 : f32 to vector<16x1xf32>
    %45 = arith.cmpf olt, %41, %44 : vector<16x1xf32>
    %cst_13 = arith.constant 0.000000e+00 : f32
    %46 = arith.cmpf olt, %cst_10, %cst_13 : f32
    %47 = vector.broadcast %46 : i1 to vector<16x1xi1>
    %48 = vector.broadcast %47 : vector<16x1xi1> to vector<16x1xi1>
    %49 = arith.xori %45, %48 : vector<16x1xi1>
    %50 = arith.andi %49, %43 : vector<16x1xi1>
    %51 = vector.broadcast %cst_10 : f32 to vector<16x1xf32>
    %52 = arith.addf %41, %51 : vector<16x1xf32>
    %53 = arith.select %50, %52, %41 : vector<16x1xi1>, vector<16x1xf32>
    %cst_14 = arith.constant 6.400000e+01 : f32
    %54 = vector.broadcast %cst_14 : f32 to vector<16x1xf32>
    %55 = arith.divf %53, %54 : vector<16x1xf32>
    %cst_15 = arith.constant 1.600000e+01 : f32
    %56 = vector.broadcast %cst_15 : f32 to vector<16x1xf32>
    %57 = arith.divf %39, %56 : vector<16x1xf32>
    %58 = math.floor %57 : vector<16x1xf32>
    %cst_16 = arith.constant 1.600000e+01 : f32
    %59 = vector.broadcast %cst_16 : f32 to vector<16x1xf32>
    %60 = arith.remf %58, %59 : vector<16x1xf32>
    %cst_17 = arith.constant 0.000000e+00 : f32
    %61 = vector.broadcast %cst_17 : f32 to vector<16x1xf32>
    %62 = arith.cmpf one, %60, %61 : vector<16x1xf32>
    %cst_18 = arith.constant 0.000000e+00 : f32
    %63 = vector.broadcast %cst_18 : f32 to vector<16x1xf32>
    %64 = arith.cmpf olt, %60, %63 : vector<16x1xf32>
    %cst_19 = arith.constant 0.000000e+00 : f32
    %65 = arith.cmpf olt, %cst_16, %cst_19 : f32
    %66 = vector.broadcast %65 : i1 to vector<16x1xi1>
    %67 = vector.broadcast %66 : vector<16x1xi1> to vector<16x1xi1>
    %68 = arith.xori %64, %67 : vector<16x1xi1>
    %69 = arith.andi %68, %62 : vector<16x1xi1>
    %70 = vector.broadcast %cst_16 : f32 to vector<16x1xf32>
    %71 = arith.addf %60, %70 : vector<16x1xf32>
    %72 = arith.select %69, %71, %60 : vector<16x1xi1>, vector<16x1xf32>
    %cst_20 = arith.constant 6.400000e+01 : f32
    %73 = vector.broadcast %cst_20 : f32 to vector<16x1xf32>
    %74 = arith.divf %72, %73 : vector<16x1xf32>
    %75 = arith.index_cast %arg0 : i32 to index
    %c0_21 = arith.constant 0 : index
    %76 = memref.load %arg3[%75, %c0_21] : memref<2x4xf32, #tpu.memory_space<smem>>
    %77 = arith.index_cast %arg0 : i32 to index
    %c1 = arith.constant 1 : index
    %78 = memref.load %arg3[%77, %c1] : memref<2x4xf32, #tpu.memory_space<smem>>
    %79 = arith.index_cast %arg0 : i32 to index
    %c2 = arith.constant 2 : index
    %80 = memref.load %arg3[%79, %c2] : memref<2x4xf32, #tpu.memory_space<smem>>
    %81 = arith.index_cast %arg0 : i32 to index
    %c3 = arith.constant 3 : index
    %82 = memref.load %arg3[%81, %c3] : memref<2x4xf32, #tpu.memory_space<smem>>
    %83 = vector.broadcast %76 : f32 to vector<16x1xf32>
    %84 = arith.divf %55, %83 : vector<16x1xf32>
    %85 = vector.broadcast %80 : f32 to vector<16x1xf32>
    %86 = arith.addf %84, %85 : vector<16x1xf32>
    %87 = vector.broadcast %76 : f32 to vector<16x1xf32>
    %88 = arith.mulf %86, %87 : vector<16x1xf32>
    %89 = vector.broadcast %78 : f32 to vector<16x1xf32>
    %90 = arith.divf %74, %89 : vector<16x1xf32>
    %91 = vector.broadcast %82 : f32 to vector<16x1xf32>
    %92 = arith.addf %90, %91 : vector<16x1xf32>
    %93 = vector.broadcast %78 : f32 to vector<16x1xf32>
    %94 = arith.mulf %92, %93 : vector<16x1xf32>
    %c0_22 = arith.constant 0 : index
    %c0_23 = arith.constant 0 : index
    %95 = vector.load %arg4[%c0_22, %c0_23] : memref<16x1xf32, #tpu.memory_space<vmem>>, vector<16x1xf32>
    %c0_24 = arith.constant 0 : index
    %c0_25 = arith.constant 0 : index
    %96 = vector.load %arg5[%c0_24, %c0_25] : memref<16x16xf32, #tpu.memory_space<vmem>>, vector<16x16xf32>
    %c0_26 = arith.constant 0 : index
    %c0_27 = arith.constant 0 : index
    %97 = vector.load %arg6[%c0_26, %c0_27] : memref<2x768xf32, #tpu.memory_space<vmem>>, vector<2x768xf32>
    %c0_28 = arith.constant 0 : index
    %c0_29 = arith.constant 0 : index
    %98 = vector.load %arg7[%c0_28, %c0_29] : memref<1x384xf32, #tpu.memory_space<vmem>>, vector<1x384xf32>
    %99 = vector.extract_strided_slice %97 {offsets = [0, 0], sizes = [1, 768], strides = [1, 1]} : vector<2x768xf32> to vector<1x768xf32>
    %100 = vector.broadcast %88 : vector<16x1xf32> to vector<16x768xf32>
    %101 = vector.broadcast %99 : vector<1x768xf32> to vector<16x768xf32>
    %102 = arith.mulf %100, %101 : vector<16x768xf32>
    %103 = vector.extract_strided_slice %97 {offsets = [1, 0], sizes = [1, 768], strides = [1, 1]} : vector<2x768xf32> to vector<1x768xf32>
    %104 = vector.broadcast %94 : vector<16x1xf32> to vector<16x768xf32>
    %105 = vector.broadcast %103 : vector<1x768xf32> to vector<16x768xf32>
    %106 = arith.mulf %104, %105 : vector<16x768xf32>
    %107 = arith.addf %102, %106 : vector<16x768xf32>
    %108 = vector.extract_strided_slice %107 {offsets = [0, 0], sizes = [16, 384], strides = [1, 1]} : vector<16x768xf32> to vector<16x384xf32>
    %109 = vector.extract_strided_slice %107 {offsets = [0, 384], sizes = [16, 384], strides = [1, 1]} : vector<16x768xf32> to vector<16x384xf32>
    %110 = vector.broadcast %95 : vector<16x1xf32> to vector<16x384xf32>
    %111 = arith.mulf %110, %108 : vector<16x384xf32>
    %cst_30 = arith.constant dense<0.000000e+00> : vector<16x384xf32>
    %112 = tpu.matmul %96, %109, %cst_30 {dimension_numbers = #tpu.dot_dimension_numbers<[1], [0], [0], [1], [0, 0, 1, 1], [], []>} : vector<16x16xf32>, vector<16x384xf32>, vector<16x384xf32> -> vector<16x384xf32>
    %113 = arith.addf %111, %112 : vector<16x384xf32>
    %114 = vector.broadcast %98 : vector<1x384xf32> to vector<16x384xf32>
    %115 = arith.addf %113, %114 : vector<16x384xf32>
    %cst_31 = arith.constant 0.000000e+00 : f32
    %116 = vector.broadcast %cst_31 : f32 to vector<16x384xf32>
    %117 = arith.maximumf %115, %116 : vector<16x384xf32>
    %c0_32 = arith.constant 0 : index
    %c0_33 = arith.constant 0 : index
    %118 = vector.load %arg8[%c0_32, %c0_33] : memref<384x768xbf16, #tpu.memory_space<vmem>>, vector<384x768xbf16>
    %c0_34 = arith.constant 0 : index
    %c0_35 = arith.constant 0 : index
    %119 = vector.load %arg9[%c0_34, %c0_35] : memref<1x384xf32, #tpu.memory_space<vmem>>, vector<1x384xf32>
    %120 = arith.truncf %117 : vector<16x384xf32> to vector<16x384xbf16>
    %cst_36 = arith.constant dense<0.000000e+00> : vector<16x768xf32>
    %121 = tpu.matmul %120, %118, %cst_36 {dimension_numbers = #tpu.dot_dimension_numbers<[1], [0], [0], [1], [0, 0, 1, 1], [], []>} : vector<16x384xbf16>, vector<384x768xbf16>, vector<16x768xf32> -> vector<16x768xf32>
    %122 = vector.extract_strided_slice %121 {offsets = [0, 0], sizes = [16, 384], strides = [1, 1]} : vector<16x768xf32> to vector<16x384xf32>
    %123 = vector.extract_strided_slice %121 {offsets = [0, 384], sizes = [16, 384], strides = [1, 1]} : vector<16x768xf32> to vector<16x384xf32>
    %124 = vector.broadcast %95 : vector<16x1xf32> to vector<16x384xf32>
    %125 = arith.mulf %124, %122 : vector<16x384xf32>
    %cst_37 = arith.constant dense<0.000000e+00> : vector<16x384xf32>
    %126 = tpu.matmul %96, %123, %cst_37 {dimension_numbers = #tpu.dot_dimension_numbers<[1], [0], [0], [1], [0, 0, 1, 1], [], []>} : vector<16x16xf32>, vector<16x384xf32>, vector<16x384xf32> -> vector<16x384xf32>
    %127 = arith.addf %125, %126 : vector<16x384xf32>
    %128 = vector.broadcast %119 : vector<1x384xf32> to vector<16x384xf32>
    %129 = arith.addf %127, %128 : vector<16x384xf32>
    %cst_38 = arith.constant 0.000000e+00 : f32
    %130 = vector.broadcast %cst_38 : f32 to vector<16x384xf32>
    %131 = arith.maximumf %129, %130 : vector<16x384xf32>
    %c0_39 = arith.constant 0 : index
    %c0_40 = arith.constant 0 : index
    %132 = vector.load %arg10[%c0_39, %c0_40] : memref<384x768xbf16, #tpu.memory_space<vmem>>, vector<384x768xbf16>
    %c0_41 = arith.constant 0 : index
    %c0_42 = arith.constant 0 : index
    %133 = vector.load %arg11[%c0_41, %c0_42] : memref<1x384xf32, #tpu.memory_space<vmem>>, vector<1x384xf32>
    %134 = arith.truncf %131 : vector<16x384xf32> to vector<16x384xbf16>
    %cst_43 = arith.constant dense<0.000000e+00> : vector<16x768xf32>
    %135 = tpu.matmul %134, %132, %cst_43 {dimension_numbers = #tpu.dot_dimension_numbers<[1], [0], [0], [1], [0, 0, 1, 1], [], []>} : vector<16x384xbf16>, vector<384x768xbf16>, vector<16x768xf32> -> vector<16x768xf32>
    %136 = vector.extract_strided_slice %135 {offsets = [0, 0], sizes = [16, 384], strides = [1, 1]} : vector<16x768xf32> to vector<16x384xf32>
    %137 = vector.extract_strided_slice %135 {offsets = [0, 384], sizes = [16, 384], strides = [1, 1]} : vector<16x768xf32> to vector<16x384xf32>
    %138 = vector.broadcast %95 : vector<16x1xf32> to vector<16x384xf32>
    %139 = arith.mulf %138, %136 : vector<16x384xf32>
    %cst_44 = arith.constant dense<0.000000e+00> : vector<16x384xf32>
    %140 = tpu.matmul %96, %137, %cst_44 {dimension_numbers = #tpu.dot_dimension_numbers<[1], [0], [0], [1], [0, 0, 1, 1], [], []>} : vector<16x16xf32>, vector<16x384xf32>, vector<16x384xf32> -> vector<16x384xf32>
    %141 = arith.addf %139, %140 : vector<16x384xf32>
    %142 = vector.broadcast %133 : vector<1x384xf32> to vector<16x384xf32>
    %143 = arith.addf %141, %142 : vector<16x384xf32>
    %cst_45 = arith.constant 0.000000e+00 : f32
    %144 = vector.broadcast %cst_45 : f32 to vector<16x384xf32>
    %145 = arith.maximumf %143, %144 : vector<16x384xf32>
    %c0_46 = arith.constant 0 : index
    %c0_47 = arith.constant 0 : index
    %146 = vector.load %arg12[%c0_46, %c0_47] : memref<384x256xbf16, #tpu.memory_space<vmem>>, vector<384x256xbf16>
    %c0_48 = arith.constant 0 : index
    %c0_49 = arith.constant 0 : index
    %147 = vector.load %arg13[%c0_48, %c0_49] : memref<1x128xf32, #tpu.memory_space<vmem>>, vector<1x128xf32>
    %148 = arith.truncf %145 : vector<16x384xf32> to vector<16x384xbf16>
    %cst_50 = arith.constant dense<0.000000e+00> : vector<16x256xf32>
    %149 = tpu.matmul %148, %146, %cst_50 {dimension_numbers = #tpu.dot_dimension_numbers<[1], [0], [0], [1], [0, 0, 1, 1], [], []>} : vector<16x384xbf16>, vector<384x256xbf16>, vector<16x256xf32> -> vector<16x256xf32>
    %150 = vector.extract_strided_slice %149 {offsets = [0, 0], sizes = [16, 128], strides = [1, 1]} : vector<16x256xf32> to vector<16x128xf32>
    %151 = vector.extract_strided_slice %149 {offsets = [0, 128], sizes = [16, 128], strides = [1, 1]} : vector<16x256xf32> to vector<16x128xf32>
    %152 = vector.broadcast %95 : vector<16x1xf32> to vector<16x128xf32>
    %153 = arith.mulf %152, %150 : vector<16x128xf32>
    %cst_51 = arith.constant dense<0.000000e+00> : vector<16x128xf32>
    %154 = tpu.matmul %96, %151, %cst_51 {dimension_numbers = #tpu.dot_dimension_numbers<[1], [0], [0], [1], [0, 0, 1, 1], [], []>} : vector<16x16xf32>, vector<16x128xf32>, vector<16x128xf32> -> vector<16x128xf32>
    %155 = arith.addf %153, %154 : vector<16x128xf32>
    %156 = vector.broadcast %147 : vector<1x128xf32> to vector<16x128xf32>
    %157 = arith.addf %155, %156 : vector<16x128xf32>
    %c0_52 = arith.constant 0 : index
    %c0_53 = arith.constant 0 : index
    %c0_54 = arith.constant 0 : index
    %158 = vector.load %arg15[%c0_52, %c0_53, %c0_54] : memref<1x16x128xf32, #tpu.memory_space<vmem>>, vector<1x16x128xf32>
    %159 = vector.shape_cast %158 : vector<1x16x128xf32> to vector<16x128xf32>
    %160 = vector.shape_cast %157 : vector<16x128xf32> to vector<1x16x128xf32>
    tpu.vector_store %arg15[%c0_52, %c0_53, %c0_54], %160 {strides = array<i32>} : memref<1x16x128xf32, #tpu.memory_space<vmem>>, vector<1x16x128xf32>,
    return
  }
  func.func @transform_0(%arg0: i32) -> (i32, i32, i32) {
    %c0_i32 = arith.constant 0 : i32
    %c0_i32_0 = arith.constant 0 : i32
    %c0_i32_1 = arith.constant 0 : i32
    return %arg0, %c0_i32, %c0_i32_0 : i32, i32, i32
  }
  func.func @transform_1(%arg0: i32) -> (i32, i32) {
    %c0_i32 = arith.constant 0 : i32
    %c0_i32_0 = arith.constant 0 : i32
    %c0_i32_1 = arith.constant 0 : i32
    return %c0_i32, %c0_i32_0 : i32, i32
  }
  func.func @transform_2(%arg0: i32) -> (i32, i32) {
    %c0_i32 = arith.constant 0 : i32
    %c0_i32_0 = arith.constant 0 : i32
    %c0_i32_1 = arith.constant 0 : i32
    return %c0_i32, %c0_i32_0 : i32, i32
  }
  func.func @transform_3(%arg0: i32) -> (i32, i32) {
    %c0_i32 = arith.constant 0 : i32
    %c0_i32_0 = arith.constant 0 : i32
    %c0_i32_1 = arith.constant 0 : i32
    return %c0_i32, %c0_i32_0 : i32, i32
  }
  func.func @transform_4(%arg0: i32) -> (i32, i32) {
    %c0_i32 = arith.constant 0 : i32
    %c0_i32_0 = arith.constant 0 : i32
    %c0_i32_1 = arith.constant 0 : i32
    return %c0_i32, %c0_i32_0 : i32, i32
  }
  func.func @transform_5(%arg0: i32) -> (i32, i32) {
    %c0_i32 = arith.constant 0 : i32
    %c0_i32_0 = arith.constant 0 : i32
    %c0_i32_1 = arith.constant 0 : i32
    return %c0_i32, %c0_i32_0 : i32, i32
  }
  func.func @transform_6(%arg0: i32) -> (i32, i32) {
    %c0_i32 = arith.constant 0 : i32
    %c0_i32_0 = arith.constant 0 : i32
    %c0_i32_1 = arith.constant 0 : i32
    return %c0_i32, %c0_i32_0 : i32, i32
  }
  func.func @transform_7(%arg0: i32) -> (i32, i32) {
    %c0_i32 = arith.constant 0 : i32
    %c0_i32_0 = arith.constant 0 : i32
    %c0_i32_1 = arith.constant 0 : i32
    return %c0_i32, %c0_i32_0 : i32, i32
  }
  func.func @transform_8(%arg0: i32) -> (i32, i32) {
    %c0_i32 = arith.constant 0 : i32
    %c0_i32_0 = arith.constant 0 : i32
    %c0_i32_1 = arith.constant 0 : i32
    return %c0_i32, %c0_i32_0 : i32, i32
  }
  func.func @transform_9(%arg0: i32) -> (i32, i32) {
    %c0_i32 = arith.constant 0 : i32
    %c0_i32_0 = arith.constant 0 : i32
    %c0_i32_1 = arith.constant 0 : i32
    return %c0_i32, %c0_i32_0 : i32, i32
  }
  func.func @transform_10(%arg0: i32) -> (i32, i32) {
    %c0_i32 = arith.constant 0 : i32
    %c0_i32_0 = arith.constant 0 : i32
    %c0_i32_1 = arith.constant 0 : i32
    return %c0_i32, %c0_i32_0 : i32, i32
  }
  func.func @transform_11(%arg0: i32) -> (i32, i32) {
    %c0_i32 = arith.constant 0 : i32
    %c0_i32_0 = arith.constant 0 : i32
    %c0_i32_1 = arith.constant 0 : i32
    return %c0_i32, %c0_i32_0 : i32, i32
  }
  func.func @transform_12(%arg0: i32) -> (i32, i32) {
    %c0_i32 = arith.constant 0 : i32
    %c0_i32_0 = arith.constant 0 : i32
    %c0_i32_1 = arith.constant 0 : i32
    return %c0_i32, %c0_i32_0 : i32, i32
  }
  func.func @transform_13(%arg0: i32) -> (i32, i32, i32) {
    %c0_i32 = arith.constant 0 : i32
    %c0_i32_0 = arith.constant 0 : i32
    %c0_i32_1 = arith.constant 0 : i32
    return %arg0, %c0_i32, %c0_i32_0 : i32, i32, i32
  }
  func.func @transform_14(%arg0: i32) -> (i32, i32, i32) {
    %c0_i32 = arith.constant 0 : i32
    %c0_i32_0 = arith.constant 0 : i32
    %c0_i32_1 = arith.constant 0 : i32
    return %arg0, %c0_i32, %c0_i32_0 : i32, i32, i32
  }
}

</mosaic_0001>

<bundles_post_ra>
// kernel: _mynet_forward.1
= control target key start
LH: loop header
LB: loop body
LE: loop exit
PB: predicated region body
PF: predicated region fallthrough
CT: control target
= control target key end

     0   :  { %s6257_s0 = inlined_call_operand.vmem [shape: f32[2,3,256], index: 0, kind: input, shape index: {}]   ;;  %s6258_s1 = inlined_call_operand.vmem [shape: f32[32,3], index: 1, kind: input, shape index: {}]   ;;  %s6259_s2 = inlined_call_operand.vmem [shape: f32[2,4], index: 2, kind: input, shape index: {}]   ;;  %s6260_s3 = inlined_call_operand.vmem [shape: f32[16,1], index: 3, kind: input, shape index: {}]   ;;  %s6261_s4 = inlined_call_operand.vmem [shape: f32[16,16], index: 4, kind: input, shape index: {}]   ;;  %s6262_s5 = inlined_call_operand.vmem [shape: f32[2,768], index: 5, kind: input, shape index: {}]   ;;  %s6263_s6 = inlined_call_operand.vmem [shape: f32[1,384], index: 6, kind: input, shape index: {}]   ;;  %s6264_s7 = inlined_call_operand.hbm [shape: bf16[384,768], index: 7, kind: input, shape index: {}]   ;;  %s6265_s8 = inlined_call_operand.vmem [shape: f32[1,384], index: 8, kind: input, shape index: {}]   ;;  %s6266_s9 = inlined_call_operand.hbm [shape: bf16[384,768], index: 9, kind: input, shape index: {}]   ;;  %s6267_s10 = inlined_call_operand.vmem [shape: f32[1,384], index: 10, kind: input, shape index: {}]   ;;  %s6268_s11 = inlined_call_operand.hbm [shape: bf16[384,256], index: 11, kind: input, shape index: {}]   ;;  %s6269_s12 = inlined_call_operand.vmem [shape: f32[1,128], index: 12, kind: input, shape index: {}]   ;;  %s6270_s13 = inlined_call_operand.vmem [shape: f32[2,32,256], index: 13, kind: output, shape index: {0}]   ;;  %s6271_s14 = inlined_call_operand.vmem [shape: f32[2,16,128], index: 14, kind: output, shape index: {1}]  }
   0x1   :  { %6276 = sst [smem:[#allocation12_spill]] %s6259_s2 }
   0x2   :  { %6277 = sst [smem:[#allocation13_spill]] %s6266_s9 }
   0x3   :  { %20 = vsyncpa [#allocation4], 0 }
   0x4   :  { %21 = vsyncpa [#allocation3], 0 }
   0x5   :  { %22 = vsyncpa [#allocation7], 0  ;;  %s5714_s29 = smov 0  }
   0x6 LB: > { %s5720_s30 = sadd.s32 4294967295, %s5625_s29   ;;  %p4447_p0 = scmp.ge.s32.totalorder %s5625_s29, 1  ;;  %s5625_s29 = sphi %s5714_s29, %s28_s29  }
   0x7   : > { %p363_p1 = scmp.lt.s32.totalorder %s5625_s29, 3  ;;  %p6274_p2 = scmp.eq.s32.totalorder %s5720_s30, 0 }
   0x8   : > { %s5627_s16 = smov [#allocation6]   ;;  %s6279_s2 = sld [smem:[#allocation12_spill]] }
   0x9   : > { %p5725_p3 = pnand %p4447_p0, %p363_p1  ;;  %s417_s17 = sshll.u32 %s5627_s16, 4  ;;  %s5729_s17 = int_to_ptr.vmem [resolvable:$true] %s417_s17 }
   0xa   : > { %s5628_s22 = smov [#allocation5]   ;;  %s5629_s24 = smov [#allocation8]  }
   0xb   : > { %s6278_s15 = scalar_select %p5725_p3, 1, 0 }
   0xc   : > { %p4937_p4 = pneg %p5725_p3  ;;  %s401_s23 = sshll.u32 %s5628_s22, 4  ;;  %s5744_s23 = int_to_ptr.vmem [resolvable:$true] %s401_s23 }
   0xd   : > { %s5746_s25 = sshll.u32 %s5629_s24, 4  ;;  %s6281_s9 = sld [smem:[#allocation13_spill]]  ;;  %s434_s25 = int_to_ptr.vmem [resolvable:$true] %s5746_s25 }
   0xe   : > { %s379_s20 = sshll.u32 %s6279_s2, 4  ;;  %p5740_p5 = pnand %p6274_p2, %p4937_p4  ;;  %s5736_s20 = int_to_ptr.vmem [resolvable:$true] %s379_s20 }
  0x10   : > { %p5756_p7 = pneg %p5740_p5 }
  0x13   : > { %s5508_s28 = scalar_lea.hbm %s6281_s9, 18432 }
  0x14   : > { %p5509_p6 = scmp.ne.s32.totalorder %s6281_s9, %s5508_s28  ;;  %p5515_p10 = scmp.lt.u32.totalorder %s5508_s28, %s6281_s9 }
  0x16   : > { %p5511_p8 = pnand %p5756_p7, %p5509_p6 }
  0x18   : > { %p5512_p9 = pneg %p5511_p8 }
  0x1a   : > { %p5517_p11 = pnand %p5515_p10, %p5512_p9 }
  0x1c   : > { %5520 = shalt.err (!%p5517_p11)
}
  0x1d   : > { %s5521_s26 = scalar_lea.vmem %s5729_s17, 18432  ;;  %p5529_p1 = scmp.lt.s32.totalorder %s5729_s17, %s5729_s17 }
  0x1e   : > { %p5522_p12 = scmp.ne.s32.totalorder %s5729_s17, %s5521_s26  ;;  %p5530_p4 = scmp.lt.s32.totalorder %s5521_s26, %s5521_s26 }
  0x20   : > { %p5524_p13 = pnand %p5522_p12, %p5756_p7  ;;  %p5531_p6 = por %p5530_p4, %p5529_p1 }
  0x22   : > { %p5525_p0 = pneg %p5524_p13 }
  0x24   : > { %p5532_p8 = pnand %p5531_p6, %p5525_p0 }
  0x26   : > { %5535 = shalt.err (!%p5532_p8)
}
  0x27   : > { %s6272_s27 = smov 384   ;;  %s6273_s28 = smov 24  }
  0x28   : > { %4946 = dma.hbm_to_vmem [thread:$0]  (!%p5740_p5), %s6281_s9, 18432, %s5729_s17, [#allocation7], %s6272_s27, %s6272_s27, %s6273_s28  }
  0x29   : > { %s5536_s22 = scalar_lea.vmem %s5736_s20, 32  ;;  %p5544_p12 = scmp.lt.s32.totalorder %s5736_s20, %s5736_s20 }
  0x2a   : > { %p5537_p9 = scmp.ne.s32.totalorder %s5736_s20, %s5536_s22  ;;  %p5545_p13 = scmp.lt.s32.totalorder %s5536_s22, %s5536_s22 }
  0x2c   : > { %p5539_p10 = pnand %p5537_p9, %p5756_p7  ;;  %p5546_p0 = por %p5545_p13, %p5544_p12 }
  0x2e   : > { %p5540_p11 = pneg %p5539_p10 }
  0x30   : > { %p5547_p1 = pnand %p5546_p0, %p5540_p11 }
  0x32   : > { %5550 = shalt.err (!%p5547_p1)
}
  0x33   : > { %s5632_s24 = smov [#allocation2]   ;;  %s5551_s17 = scalar_lea.hbm %s6264_s7, 18432 }
  0x34   : > { %4940 = dma.vmem_to_smem (!%p5740_p5), %s5736_s20, 32, %s5632_s24, [#allocation4]  }
  0x35   : > { %p5552_p4 = scmp.ne.s32.totalorder %s6264_s7, %s5551_s17  ;;  %p5558_p9 = scmp.lt.u32.totalorder %s5551_s17, %s6264_s7 }
  0x37   : > { %p5554_p6 = pnand %p5552_p4, %p5756_p7 }
  0x39   : > { %p5555_p8 = pneg %p5554_p6 }
  0x3b   : > { %p5560_p10 = pnand %p5558_p9, %p5555_p8 }
  0x3d   : > { %5563 = shalt.err (!%p5560_p10)
}
  0x3e   : > { %s5564_s20 = scalar_lea.vmem %s5744_s23, 18432  ;;  %p5572_p0 = scmp.lt.s32.totalorder %s5744_s23, %s5744_s23 }
  0x3f   : > { %p5565_p11 = scmp.ne.s32.totalorder %s5744_s23, %s5564_s20  ;;  %p5573_p1 = scmp.lt.s32.totalorder %s5564_s20, %s5564_s20 }
  0x41   : > { %p5567_p12 = pnand %p5565_p11, %p5756_p7  ;;  %p5574_p4 = por %p5573_p1, %p5572_p0 }
  0x43   : > { %p5568_p13 = pneg %p5567_p12 }
  0x45   : > { %p5575_p6 = pnand %p5574_p4, %p5568_p13 }
  0x47   : > { %5578 = shalt.err (!%p5575_p6)
}
  0x48   : > { %s6283_s27 = smov 24   ;;  %s6284_s28 = smov 384  }
  0x49   : > { %4943 = dma.hbm_to_vmem [thread:$0]  (!%p5740_p5), %s6264_s7, 18432, %s5744_s23, [#allocation3], %s6284_s28, %s6284_s28, %s6283_s27  }
  0x4a   : > { %s5579_s18 = scalar_lea.hbm %s6268_s11, 6144 }
  0x4b   : > { %p5580_p8 = scmp.ne.s32.totalorder %s6268_s11, %s5579_s18  ;;  %p5586_p11 = scmp.lt.u32.totalorder %s5579_s18, %s6268_s11 }
  0x4d   : > { %p5582_p9 = pnand %p5580_p8, %p5756_p7 }
  0x4f   : > { %p5583_p10 = pneg %p5582_p9 }
  0x51   : > { %p5588_p12 = pnand %p5586_p11, %p5583_p10 }
  0x53   : > { %5591 = shalt.err (!%p5588_p12)
}
  0x54   : > { %s5592_s24 = scalar_lea.vmem %s434_s25, 6144  ;;  %p5600_p4 = scmp.lt.s32.totalorder %s434_s25, %s434_s25 }
  0x55   : > { %p5593_p13 = scmp.ne.s32.totalorder %s434_s25, %s5592_s24  ;;  %p5601_p6 = scmp.lt.s32.totalorder %s5592_s24, %s5592_s24 }
  0x57   : > { %p5595_p0 = pnand %p5593_p13, %p5756_p7  ;;  %p5602_p2 = por %p5601_p6, %p5600_p4 }
  0x59   : > { %p5596_p1 = pneg %p5595_p0 }
  0x5b   : > { %p5603_p3 = pnand %p5602_p2, %p5596_p1 }
  0x5d   : > { %5606 = shalt.err (!%p5603_p3)
}
  0x5e   : > { %s5633_s23 = smov 128   ;;  %s5634_s27 = smov 8  }
  0x5f   : > { %4949 = dma.hbm_to_vmem [thread:$0]  (!%p5740_p5), %s6268_s11, 6144, %s434_s25, [#allocation7], %s5633_s23, %s5633_s23, %s5634_s27  }
  0x60   : > { %p6285_p8 = scmp.ne.s32.totalorder %s6278_s15, 0 }
  0x61   : > { %p6286_p9 = scmp.eq.s32.totalorder (!%p6285_p8), %s5720_s30, 0 }
  0x62   : > { %460 = sbr.rel (%p6285_p8) target bundleno = 2436 (0x984), region = 72 }
  0x69   : > { %5612 = dma.done.wait (%p6286_p9), [#allocation4], 32   ;;  %p6287_p7 = pmov %p6286_p9 }
  0x6b   : > { %5614 = vsyncadd (%p6287_p7), [#allocation4], 4294967264  ;;  %p6288_p2 = pmov %p6287_p7 }
  0x6d   : > { %5616 = dma.done.wait (%p6288_p2), [#allocation3], 18432   ;;  %p6289_p3 = pmov %p6288_p2 }
  0x6e   : > { %p6290_p10 = pmov %p6288_p2 }
  0x6f   : > { %5618 = vsyncadd (%p6289_p3), [#allocation3], 4294948864 }
  0x70   : > { %5620 = dma.done.wait (%p6290_p10), [#allocation7], 24576   ;;  %p6291_p5 = pmov %p6288_p2 }
  0x72   : > { %5622 = vsyncadd (%p6291_p5), [#allocation7], 4294942720 }
  0x73   : > { %478 = sfence }
  0x74   : > { %v543_v0 = vld [vmem:[%s6258_s1 + $0x10] sm:$0xff]  ;;  %v5635_v1 = vmov 1   ;;  %v5636_v2 = vmov 0   ;;  %v544_v3 = vld [vmem:[%s6258_s1 + $0x18] sm:$0xff]  ;;  %v5637_v4 = vmov 2   ;;  %p524_p11 = scmp.lt.s32.totalorder %s5720_s30, 1  ;;  %v566_v5 = vlaneseq }
  0x75   : > { %4979 = vset.pattern.permute.xlu1 %v5635_v1  ;;  %4978 = vset.pattern.permute.xlu0 %v5636_v2  ;;  %vm1018_vm0 = vcmask 130048   ;;  %s4464_s20 = sshll.u32 %s5720_s30, 7 }
  0x76   : > { %601 = vperm.xlu1 %4979, %v543_v0   ;;  %557 = vperm.xlu0 %4978, %v543_v0   ;;  %s5862_s19 = scalar_select %p524_p11, %s5720_s30, 1  ;;  %v5866_v6 = vshrl.u32 %v566_v5, 7 }
  0x77   : > { %s825_s24 = sadd.s32 1, %s4464_s20  ;;  %s824_s27 = sld [smem:[#allocation2 + %s4464_s20]] }
  0x78   : > { %s4818_s26 = sshll.u32 %s5862_s19, 3  ;;  %v5872_v7 = vsub.s32 0, %v5866_v6  ;;  %v5875_v8 = vsub.s32 1, %v5866_v6  ;;  %v614_v9 = vsub.s32 5, %v5866_v6  ;;  %v572_v10 = vsub.s32 4, %v5866_v6  ;;  %s4819_s22 = sshll.u32 %s5862_s19, 6 }
  0x79   : > { %s528_s18 = scalar_lea.vmem %s6257_s0, %s4818_s26  ;;  %v5886_v16 = vsub.s32 2, %v5866_v6  ;;  %v664_v17 = vsub.s32 6, %v5866_v6  ;;  %s5926_s23 = scalar_lea.vmem %s6270_s13, %s4819_s22 }
  0x7a   : > { %605 = vperm.xlu1 %4979, %v544_v3   ;;  %562 = vperm.xlu0 %4978, %v544_v3   ;;  %v540_v11 = vld [vmem:[%s528_s18] sm:$0x77]  ;;  %s827_s28 = sadd.s32 2, %s4464_s20  ;;  %s826_s2 = sld [smem:[#allocation2 + %s825_s24]] }
  0x7b   : > { %v611_v12 = vrot.slane %v540_v11, %v5875_v8  ;;  %v615_v13 = vrot.slane %v540_v11, %v614_v9  ;;  %v569_v14 = vrot.slane %v540_v11, %v5872_v7  ;;  %v573_v15 = vrot.slane %v540_v11, %v572_v10  ;;  %s829_s9 = sadd.s32 3, %s4464_s20  ;;  %s5967_s15 = sld [smem:[#allocation2 + %s827_s28]] }
  0x7c   : > { %v661_v24 = vrot.slane %v540_v11, %v5886_v16  ;;  %v665_v25 = vrot.slane %v540_v11, %v664_v17  ;;  %s5971_s21 = sld [smem:[#allocation2 + %s829_s9]] }
  0x7d   : > { %v5890_v19 = vrot.slane %v611_v12, %v5875_v8  ;;  %v5893_v20 = vrot.slane %v615_v13, %v5875_v8  ;;  %v5896_v22 = vrot.slane %v569_v14, %v5872_v7  ;;  %v5899_v23 = vrot.slane %v573_v15, %v5872_v7 }
  0x7e   : > { %4981 = vset.pattern.permute.xlu1 %v5637_v4  ;;  %4980 = vset.pattern.permute.xlu0 %v5637_v4  ;;  %v5913_v36 = vrot.slane %v661_v24, %v5886_v16  ;;  %v5916_v37 = vrot.slane %v665_v25, %v5886_v16  ;;  %v729_v13 = vand.u32 127, %v566_v5 }
  0x7f   : > { %655 = vperm.xlu1 %4981, %v544_v3   ;;  %651 = vperm.xlu0 %4980, %v543_v0  }
  0x80   : > { %v730_v14 = vadd.s32 128, %v729_v13  ;;  %v731_v15 = vcvt.s32.f32 %v729_v13  ;;  %v5983_v13 = vld [vmem:[%s6262_s5 + $0x8] sm:$0xf] }
  0x83   : > { %4983 = vset.pattern.permute.xlu1 %v5636_v2  ;;  %4982 = vset.pattern.permute.xlu0 %v5636_v2 }
  0xf5   : > { %v602_v18 = vpop.permute.xlu1 %601  ;;  %v558_v21 = vpop.permute.xlu0 %557 }
  0xf6   : > { %v630_v26 = vmul.f32 %v5890_v19, %v602_v18  ;;  %v631_v27 = vmul.f32 %v5893_v20, %v602_v18  ;;  %v588_v28 = vmul.f32 %v5896_v22, %v558_v21  ;;  %v589_v29 = vmul.f32 %v5899_v23, %v558_v21 }
  0xf7   : > { %v732_v18 = vcvt.s32.f32 %v730_v14  ;;  %v835_v14 = vstv %s5967_s15  ;;  %s4820_s15 = sshll.u32 %s5862_s19, 4 }
  0xf8   : > { %v638_v38 = vadd.f32 %v630_v26, %v588_v28  ;;  %v639_v39 = vadd.f32 %v631_v27, %v589_v29  ;;  %s538_s16 = scalar_lea.vmem %s6271_s14, %s4820_s15 }
  0xf9   : > { %v606_v30 = vpop.permute.xlu1 %605  ;;  %v563_v31 = vpop.permute.xlu0 %562 }
  0xfa   : > { %v632_v32 = vmul.f32 %v5890_v19, %v606_v30  ;;  %v633_v33 = vmul.f32 %v5893_v20, %v606_v30  ;;  %v590_v34 = vmul.f32 %v5896_v22, %v563_v31  ;;  %v591_v35 = vmul.f32 %v5899_v23, %v563_v31 }
  0xfc   : > { %v640_v40 = vadd.f32 %v632_v32, %v590_v34  ;;  %v641_v41 = vadd.f32 %v633_v33, %v591_v35  ;;  %v850_v34 = vld [vmem:[%s6260_s3 + $0x8] sm:$0xff]  ;;  %v849_v35 = vld [vmem:[%s6260_s3] sm:$0xff] }
  0xfe   : > { %v656_v42 = vpop.permute.xlu1 %655  ;;  %v652_v43 = vpop.permute.xlu0 %651 }
  0xff   : > { %v682_v44 = vmul.f32 %v5913_v36, %v656_v42  ;;  %v683_v45 = vmul.f32 %v5916_v37, %v656_v42  ;;  %v680_v46 = vmul.f32 %v5913_v36, %v652_v43  ;;  %v681_v47 = vmul.f32 %v5916_v37, %v652_v43  ;;  %v541_v43 = vld [vmem:[%s6258_s1] sm:$0xff] }
 0x100   : > { %v5638_v42 = vmov 0.0  }
 0x101   : > { %v690_v48 = vadd.f32 %v682_v44, %v640_v40  ;;  %v691_v49 = vadd.f32 %v683_v45, %v641_v41  ;;  %v688_v50 = vadd.f32 %v680_v46, %v638_v38  ;;  %v689_v51 = vadd.f32 %v681_v47, %v639_v39  ;;  %v5943_v39 = vld [vmem:[%s6262_s5] sm:$0xff]  ;;  %1089 = vmatprep.mubr.f32.mxu0 %v5638_v42  ;;  %v542_v44 = vld [vmem:[%s6258_s1 + $0x8] sm:$0xff] }
 0x102   : > { %v930_v38 = vsub.s32 3, %v5866_v6  ;;  %v5953_v41 = vld [vmem:[%s6261_s4] sm:$0xff] }
 0x103   : > { %698 = vst [vmem:[%s5926_s23 + $0x30] sm:$0xff] %v690_v48  ;;  %699 = vst [vmem:[%s5926_s23 + $0x38] sm:$0xff] %v691_v49  ;;  %v702_v52 = vmul.f32 1000.0, %v690_v48  ;;  %v703_v53 = vmul.f32 1000.0, %v691_v49  ;;  %v700_v54 = vmul.f32 1000.0, %v688_v50  ;;  %v701_v55 = vmul.f32 1000.0, %v689_v51  ;;  %4841 = vmatprep.mubr.msk.f32.mxu1 %vm1018_vm0, %v5953_v41 }
 0x104   : > { %696 = vst [vmem:[%s5926_s23 + $0x20] sm:$0xff] %v688_v50  ;;  %697 = vst [vmem:[%s5926_s23 + $0x28] sm:$0xff] %v689_v51  ;;  %v5948_v40 = vrot.slane %v5943_v39, %v930_v38 }
 0x105   : > { %v707_v56 = vmax.f32 %v702_v52, %v703_v53  ;;  %v704_v57 = vmax.f32 %v700_v54, %v701_v55 }
 0x107   : > { %708 = vmax.xlane.f32.xlu0 %v707_v56  ;;  %705 = vmax.xlane.f32.xlu1 %v704_v57 }
 0x194   : > { %v709_v58 = vpop.xlane.xlu0 %708  ;;  %v706_v59 = vpop.xlane.xlu1 %705 }
 0x195   : > { %v712_v60 = vsub.f32 %v702_v52, %v709_v58  ;;  %v713_v61 = vsub.f32 %v703_v53, %v709_v58  ;;  %v710_v62 = vsub.f32 %v700_v54, %v706_v59  ;;  %v711_v63 = vsub.f32 %v701_v55, %v706_v59 }
 0x196   : > { %v5974_v59 = vstv %s824_s27 }
 0x197   : > { %v718_v0 = vmul.f32 1.442695, %v712_v60  ;;  %v720_v3 = vmul.f32 1.442695, %v713_v61  ;;  %v714_v11 = vmul.f32 1.442695, %v710_v62 }
 0x198   : > { %v716_v12 = vmul.f32 1.442695, %v711_v63  ;;  %v5976_v63 = vstv %s826_s2 }
 0x199   : > { %5490 = vpow2.f32 %v718_v0 }
 0x19a   : > { %5492 = vpow2.f32 %v720_v3 }
 0x19b   : > { %5494 = vpow2.f32 %v714_v11 }
 0x19c   : > { %5496 = vpow2.f32 %v716_v12 }
 0x1a3   : > { %v5491_v21 = vpop.eup %5490 }
 0x1a4   : > { %v5493_v24 = vpop.eup %5492  ;;  %v735_v27 = vmul.f32 %v5491_v21, %v731_v15 }
 0x1a5   : > { %v5495_v25 = vpop.eup %5494  ;;  %v725_v26 = vadd.f32 %v5493_v24, %v5491_v21  ;;  %v736_v28 = vmul.f32 %v5493_v24, %v732_v18 }
 0x1a6   : > { %v5497_v29 = vpop.eup %5496  ;;  %v733_v31 = vmul.f32 %v5495_v25, %v731_v15 }
 0x1a7   : > { %726 = vadd.xlane.f32.xlu1 %v725_v26  ;;  %v722_v30 = vadd.f32 %v5497_v29, %v5495_v25  ;;  %v734_v32 = vmul.f32 %v5497_v29, %v732_v18  ;;  %v740_v33 = vadd.f32 %v736_v28, %v735_v27  ;;  %v844_v25 = vstv %s5971_s21 }
 0x1a8   : > { %v877_v27 = vrot.slane %v5983_v13, %v5872_v7  ;;  %v881_v28 = vrot.slane %v5983_v13, %v5886_v16 }
 0x1a9   : > { %723 = vadd.xlane.f32.xlu0 %v722_v30  ;;  %v737_v5 = vadd.f32 %v734_v32, %v733_v31  ;;  %v873_v31 = vrot.slane %v5943_v39, %v664_v17  ;;  %v865_v17 = vrot.slane %v5943_v39, %v5886_v16 }
 0x1ab   : > { %741 = vadd.xlane.f32.xlu1 %v740_v33 }
 0x1ad   : > { %738 = vadd.xlane.f32.xlu0 %v737_v5  ;;  %v861_v5 = vrot.slane %v5943_v39, %v5872_v7 }
 0x1bc   : > { %1009 = vperm.xlu1 %4983, %v850_v34   ;;  %v6001_v34 = vrot.slane %v5943_v39, %v572_v10  ;;  %v6009_v10 = vrot.slane %v881_v28, %v5872_v7 }
 0x1c0   : > { %547 = vperm.xlu1 %4983, %v541_v43  }
 0x1c3   : > { %1004 = vperm.xlu0 %4982, %v849_v35  }
 0x1c4   : > { %552 = vperm.xlu1 %4983, %v542_v44  }
 0x1c8   : > { %4984 = vset.pattern.permute.xlu1 %v5635_v1 }
 0x1c9   : > { %593 = vperm.xlu1 %4984, %v541_v43  }
 0x1cd   : > { %597 = vperm.xlu1 %4984, %v542_v44  }
 0x1d1   : > { %4985 = vset.pattern.permute.xlu1 %v5637_v4 }
 0x1d2   : > { %643 = vperm.xlu1 %4985, %v541_v43  }
 0x1d6   : > { %647 = vperm.xlu1 %4985, %v542_v44  }
 0x234   : > { %v727_v45 = vpop.xlane.xlu1 %726 }
 0x235   : > { %5498 = vrcp.f32 %v727_v45 }
 0x236   : > { %v724_v46 = vpop.xlane.xlu0 %723 }
 0x237   : > { %5500 = vrcp.f32 %v724_v46 }
 0x238   : > { %v742_v48 = vpop.xlane.xlu1 %741  ;;  %5502 = vrcp.f32 %v5974_v59 }
 0x239   : > { %5504 = vrcp.f32 %v5976_v63 }
 0x23a   : > { %v739_v1 = vpop.xlane.xlu0 %738 }
 0x23f   : > { %v5499_v47 = vpop.eup %5498 }
 0x240   : > { %v746_v49 = vmul.f32 %v5499_v47, %v742_v48  ;;  %v6004_v47 = vrot.slane %v877_v27, %v5872_v7 }
 0x241   : > { %v5501_v50 = vpop.eup %5500 }
 0x242   : > { %v744_v51 = vmul.f32 %v5501_v50, %v739_v1  ;;  %v748_v52 = vfloor.f32 %v746_v49 }
 0x244   : > { %v747_v4 = vfloor.f32 %v744_v51  ;;  %v760_v53 = vand.u32 2147483647, %v748_v52  ;;  %v5969_v54 = vmul.f32 0.0625, %v748_v52  ;;  %v769_v44 = vand.u32 2147483648, %v748_v52 }
 0x245   : > { %v6012_v51 = vrot.slane %v873_v31, %v5872_v7  ;;  %v938_v52 = vsub.s32 7, %v5866_v6 }
 0x246   : > { %v749_v55 = vand.u32 2147483647, %v747_v4  ;;  %v785_v56 = vmul.f32 0.0625, %v747_v4  ;;  %v762_v57 = vmul.f32 0.0625, %v760_v53  ;;  %v788_v58 = vfloor.f32 %v5969_v54 }
 0x247   : > { %v758_v49 = vand.u32 2147483648, %v747_v4 }
 0x248   : > { %v751_v60 = vmul.f32 0.0625, %v749_v55  ;;  %v787_v61 = vfloor.f32 %v785_v56  ;;  %v763_v62 = vfloor.f32 %v762_v57  ;;  %v800_v0 = vand.u32 2147483647, %v788_v58 }
 0x24a   : > { %v752_v3 = vfloor.f32 %v751_v60  ;;  %v789_v11 = vand.u32 2147483647, %v787_v61  ;;  %v764_v12 = vmul.f32 16.0, %v763_v62  ;;  %v802_v15 = vmul.f32 0.0625, %v800_v0 }
 0x24b   : > { %v798_v57 = vand.u32 2147483648, %v787_v61  ;;  %v943_v61 = vrot.slane %v5983_v13, %v5875_v8 }
 0x24c   : > { %v753_v18 = vmul.f32 16.0, %v752_v3  ;;  %v791_v21 = vmul.f32 0.0625, %v789_v11  ;;  %v765_v24 = vsub.f32 %v760_v53, %v764_v12  ;;  %v803_v26 = vfloor.f32 %v802_v15 }
 0x24d   : > { %v809_v15 = vand.u32 2147483648, %v788_v58 }
 0x24e   : > { %v754_v29 = vsub.f32 %v749_v55, %v753_v18  ;;  %v792_v30 = vfloor.f32 %v791_v21  ;;  %vm766_vm1 = vcmp.eq.f32.partialorder %v765_v24, 16.0  ;;  %v804_v33 = vmul.f32 16.0, %v803_v26  ;;  %v5503_v55 = vpop.eup %5502 }
 0x24f   : > { %v767_v32 = vsel %vm766_vm1, 0.0, %v765_v24  ;;  %v5505_v62 = vpop.eup %5504  ;;  %v891_v18 = vrot.slane %v861_v5, %v5872_v7 }
 0x250   : > { %vm755_vm2 = vcmp.eq.f32.partialorder %v754_v29, 16.0  ;;  %v793_v35 = vmul.f32 16.0, %v792_v30  ;;  %v768_v43 = vand.u32 2147483647, %v767_v32  ;;  %v805_v46 = vsub.f32 %v800_v0, %v804_v33 }
 0x251   : > { %v756_v45 = vsel %vm755_vm2, 0.0, %v754_v29  ;;  %v947_v29 = vrot.slane %v5983_v13, %v930_v38  ;;  %v927_v30 = vrot.slane %v5943_v39, %v5875_v8  ;;  %v935_v38 = vrot.slane %v5943_v39, %v614_v9 }
 0x252   : > { %v757_v48 = vand.u32 2147483647, %v756_v45  ;;  %v794_v50 = vsub.f32 %v789_v11, %v793_v35  ;;  %v770_v1 = vor.u32 %v769_v44, %v768_v43  ;;  %vm806_vm3 = vcmp.eq.f32.partialorder %v805_v46, 16.0 }
 0x253   : > { %v807_v60 = vsel %vm806_vm3, 0.0, %v805_v46  ;;  %v939_v35 = vrot.slane %v5943_v39, %v938_v52  ;;  %v899_v45 = vrot.slane %v6001_v34, %v5872_v7  ;;  %v977_v9 = vrot.slane %v947_v29, %v5875_v8 }
 0x254   : > { %v759_v53 = vor.u32 %v758_v49, %v757_v48  ;;  %vm795_vm4 = vcmp.eq.f32.partialorder %v794_v50, 16.0  ;;  %vm772_vm5 = vcmp.ne.f32.partialorder %v770_v1, 0.0  ;;  %vm774_vm6 = vcmp.lt.f32.partialorder %v770_v1, 0.0 }
 0x255   : > { %v796_v56 = vsel %vm795_vm4, 0.0, %v794_v50  ;;  %vm776_vm7 = vmand %vm774_vm6, %vm772_vm5  ;;  %v778_v4 = vadd.f32 16.0, %v770_v1  ;;  %v808_v12 = vand.u32 2147483647, %v807_v60  ;;  %v973_v49 = vrot.slane %v943_v61, %v5875_v8 }
 0x256   : > { %vm771_vm8 = vcmp.ne.f32.partialorder %v759_v53, 0.0  ;;  %vm773_vm9 = vcmp.lt.f32.partialorder %v759_v53, 0.0  ;;  %v777_v0 = vadd.f32 16.0, %v759_v53  ;;  %v797_v3 = vand.u32 2147483647, %v796_v56 }
 0x257   : > { %vm775_vm10 = vmand %vm773_vm9, %vm771_vm8  ;;  %v780_v11 = vsel %vm776_vm7, %v778_v4, %v770_v1  ;;  %v810_v28 = vor.u32 %v809_v15, %v808_v12  ;;  %v895_v50 = vrot.slane %v865_v17, %v5872_v7  ;;  %v957_v39 = vrot.slane %v927_v30, %v5875_v8 }
 0x258   : > { %v779_v21 = vsel %vm775_vm10, %v777_v0, %v759_v53  ;;  %v799_v24 = vor.u32 %v798_v57, %v797_v3  ;;  %v783_v26 = vmul.f32 0.015625, %v780_v11  ;;  %v969_v52 = vrot.slane %v939_v35, %v5875_v8 }
 0x259   : > { %v782_v27 = vmul.f32 0.015625, %v779_v21  ;;  %vm812_vm14 = vcmp.ne.f32.partialorder %v810_v28, 0.0  ;;  %vm814_vm15 = vcmp.lt.f32.partialorder %v810_v28, 0.0  ;;  %v818_v32 = vadd.f32 16.0, %v810_v28 }
 0x25a   : > { %vm811_vm11 = vcmp.ne.f32.partialorder %v799_v24, 0.0  ;;  %vm813_vm12 = vcmp.lt.f32.partialorder %v799_v24, 0.0  ;;  %v817_v54 = vadd.f32 16.0, %v799_v24  ;;  %v834_v58 = vmul.f32 %v5503_v55, %v783_v26  ;;  %vm816_vm1 = vmand %vm814_vm15, %vm812_vm14 }
 0x25b   : > { %vm815_vm13 = vmand %vm813_vm12, %vm811_vm11  ;;  %v833_v31 = vmul.f32 %v5503_v55, %v782_v27  ;;  %v820_v44 = vsel %vm816_vm1, %v818_v32, %v810_v28  ;;  %v965_v34 = vrot.slane %v935_v38, %v5875_v8  ;;  %v961_v53 = vrot.slane %v5948_v40, %v5875_v8 }
 0x25c   : > { %v819_v33 = vsel %vm815_vm13, %v817_v54, %v799_v24  ;;  %v837_v5 = vadd.f32 %v835_v14, %v834_v58  ;;  %v822_v46 = vmul.f32 0.015625, %v820_v44  ;;  %v4988_v44 = vld [vmem:[#allocation5 + $0x4] ss:$24 sps:$4 sm:$0xff]  }
 0x25d   : > { %v821_v13 = vmul.f32 0.015625, %v819_v33  ;;  %v836_v43 = vadd.f32 %v835_v14, %v833_v31 }
 0x25e   : > { %v839_v48 = vmul.f32 %v837_v5, %v5974_v59  ;;  %v843_v14 = vmul.f32 %v5505_v62, %v822_v46 }
 0x25f   : > { %v838_v6 = vmul.f32 %v836_v43, %v5974_v59  ;;  %v842_v1 = vmul.f32 %v5505_v62, %v821_v13 }
 0x260   : > { %v922_v56 = vmul.f32 %v6004_v47, %v839_v48  ;;  %v923_v17 = vmul.f32 %v6009_v10, %v839_v48  ;;  %v921_v59 = vmul.f32 %v6012_v51, %v839_v48  ;;  %v846_v57 = vadd.f32 %v844_v25, %v843_v14 }
 0x261   : > { %v845_v55 = vadd.f32 %v844_v25, %v842_v1  ;;  %v912_v4 = vmul.f32 %v891_v18, %v838_v6  ;;  %v920_v60 = vmul.f32 %v899_v45, %v839_v48  ;;  %v913_v62 = vmul.f32 %v895_v50, %v838_v6  ;;  %v4986_v1 = vld [vmem:[#allocation5] ss:$24 sps:$4 sm:$0xff]  }
 0x262   : > { %v914_v3 = vmul.f32 %v899_v45, %v838_v6  ;;  %v918_v11 = vmul.f32 %v891_v18, %v839_v48  ;;  %v919_v12 = vmul.f32 %v895_v50, %v839_v48  ;;  %v848_v40 = vmul.f32 %v846_v57, %v5976_v63  ;;  %v5009_v45 = vld [vmem:[#allocation5 + $0x304] ss:$24 sps:$4 sm:$0xff]   ;;  %v5027_v57 = vld [vmem:[#allocation5 + $0x394] ss:$24 sps:$4 sm:$0xff]  }
 0x263   : > { %v847_v0 = vmul.f32 %v845_v55, %v5976_v63  ;;  %v916_v15 = vmul.f32 %v6004_v47, %v838_v6  ;;  %v917_v21 = vmul.f32 %v6009_v10, %v838_v6  ;;  %v915_v24 = vmul.f32 %v6012_v51, %v838_v6  ;;  %v6070_v6 = vld [vmem:[%s6261_s4 + $0x8] sm:$0xff] }
 0x264   : > { %v988_v28 = vmul.f32 %v973_v49, %v848_v40  ;;  %v989_v29 = vmul.f32 %v977_v9, %v848_v40  ;;  %v987_v30 = vmul.f32 %v969_v52, %v848_v40  ;;  %v986_v54 = vmul.f32 %v965_v34, %v848_v40  ;;  %v5013_v55 = vld [vmem:[#allocation5 + $0x330] ss:$24 sps:$4 sm:$0xff]  }
 0x265   : > { %v982_v26 = vmul.f32 %v973_v49, %v847_v0  ;;  %v983_v61 = vmul.f32 %v977_v9, %v847_v0  ;;  %v981_v27 = vmul.f32 %v969_v52, %v847_v0  ;;  %v978_v25 = vmul.f32 %v957_v39, %v847_v0  ;;  %v4991_v9 = vld [vmem:[#allocation5 + $0x34] ss:$24 sps:$4 sm:$0xff]  }
 0x266   : > { %v1000_v63 = vadd.f32 %v988_v28, %v922_v56  ;;  %v1001_v33 = vadd.f32 %v989_v29, %v923_v17  ;;  %v999_v47 = vadd.f32 %v987_v30, %v921_v59  ;;  %v6059_v5 = vadd.f32 %v986_v54, %v920_v60  ;;  %v5015_v52 = vld [vmem:[#allocation5 + $0x334] ss:$24 sps:$4 sm:$0xff]   ;;  %v5021_v56 = vld [vmem:[#allocation5 + $0x364] ss:$24 sps:$4 sm:$0xff]   ;;  %v5019_v59 = vld [vmem:[#allocation5 + $0x360] ss:$24 sps:$4 sm:$0xff]  }
 0x267   : > { %v994_v58 = vadd.f32 %v982_v26, %v916_v15  ;;  %v995_v31 = vadd.f32 %v983_v61, %v917_v21  ;;  %v993_v18 = vadd.f32 %v981_v27, %v915_v24  ;;  %v6057_v32 = vadd.f32 %v978_v25, %v912_v4  ;;  %v4997_v17 = vld [vmem:[#allocation5 + $0x94] ss:$24 sps:$4 sm:$0xff]   ;;  %v4995_v4 = vld [vmem:[#allocation5 + $0x90] ss:$24 sps:$4 sm:$0xff]   ;;  %v5000_v60 = vld [vmem:[#allocation5 + $0xc4] ss:$24 sps:$4 sm:$0xff]  }
 0x268   : > { %v979_v10 = vmul.f32 %v961_v53, %v847_v0  ;;  %v980_v51 = vmul.f32 %v965_v34, %v847_v0  ;;  %v984_v35 = vmul.f32 %v957_v39, %v848_v40  ;;  %v985_v50 = vmul.f32 %v961_v53, %v848_v40  ;;  %v5007_v39 = vld [vmem:[#allocation5 + $0x300] ss:$24 sps:$4 sm:$0xff]   ;;  %v4989_v34 = vld [vmem:[#allocation5 + $0x30] ss:$24 sps:$4 sm:$0xff]   ;;  %v4994_v53 = vld [vmem:[#allocation5 + $0x64] ss:$24 sps:$4 sm:$0xff]  }
 0x269   : > { %v4865_v38 = vpack.c.bf16 %v1000_v63, %v994_v58  ;;  %v4869_v13 = vpack.c.bf16 %v1001_v33, %v995_v31  ;;  %v4867_v43 = vpack.c.bf16 %v999_v47, %v993_v18  ;;  %v5033_v0 = vld [vmem:[#allocation5 + $0x3c4] ss:$24 sps:$4 sm:$0xff]   ;;  %v5039_v40 = vld [vmem:[#allocation5 + $0x3f4] ss:$24 sps:$4 sm:$0xff]   ;;  %v5001_v15 = vld [vmem:[#allocation5 + $0xf0] ss:$24 sps:$4 sm:$0xff]   ;;  %v6082_v47 = vpop.permute.xlu1 %1009 }
 0x26a   : > { %v6061_v46 = vadd.f32 %v979_v10, %v913_v62  ;;  %v6063_v48 = vadd.f32 %v980_v51, %v914_v3  ;;  %v6065_v49 = vadd.f32 %v984_v35, %v918_v11  ;;  %v6072_v14 = vadd.f32 %v985_v50, %v919_v12  ;;  %v5025_v62 = vld [vmem:[#allocation5 + $0x390] ss:$24 sps:$4 sm:$0xff]   ;;  %v4998_v3 = vld [vmem:[#allocation5 + $0xc0] ss:$24 sps:$4 sm:$0xff]   ;;  %v5003_v11 = vld [vmem:[#allocation5 + $0xf4] ss:$24 sps:$4 sm:$0xff]  }
 0x26b   : > { %4866 = vmatprep.subr.bf16.mxu0 %v4865_v38  ;;  %4870 = vmatprep.subr.bf16.mxu1 %v4869_v13  ;;  %v5031_v12 = vld [vmem:[#allocation5 + $0x3c0] ss:$24 sps:$4 sm:$0xff]   ;;  %v5006_v21 = vld [vmem:[#allocation5 + $0x124] ss:$24 sps:$4 sm:$0xff]   ;;  %v5037_v24 = vld [vmem:[#allocation5 + $0x3f0] ss:$24 sps:$4 sm:$0xff]  }
 0x26c   : > { %4868 = vmatpush1.bf16.msra.mxu0 %v4867_v43  ;;  %4872 = vmatpush3.bf16.msra.mxu1 %v4869_v13  ;;  %v5004_v26 = vld [vmem:[#allocation5 + $0x120] ss:$24 sps:$4 sm:$0xff]   ;;  %v5012_v61 = vld [vmem:[#allocation5 + $0x154] ss:$24 sps:$4 sm:$0xff]   ;;  %v5010_v27 = vld [vmem:[#allocation5 + $0x150] ss:$24 sps:$4 sm:$0xff]  }
 0x26d   : > { %2079 = vmatprep.subr.bf16.mxu0 %v4988_v44  ;;  %2122 = vmatprep.subr.bf16.mxu1 %v5009_v45  ;;  %v5018_v25 = vld [vmem:[#allocation5 + $0x184] ss:$24 sps:$4 sm:$0xff]   ;;  %v5016_v28 = vld [vmem:[#allocation5 + $0x180] ss:$24 sps:$4 sm:$0xff]   ;;  %v5024_v29 = vld [vmem:[#allocation5 + $0x1b4] ss:$24 sps:$4 sm:$0xff]   ;;  %v548_v10 = vpop.permute.xlu1 %547 }
 0x26e   : > { %v5022_v30 = vld [vmem:[#allocation5 + $0x1b0] ss:$24 sps:$4 sm:$0xff]   ;;  %v5030_v54 = vld [vmem:[#allocation5 + $0x1e4] ss:$24 sps:$4 sm:$0xff]   ;;  %v5028_v58 = vld [vmem:[#allocation5 + $0x1e0] ss:$24 sps:$4 sm:$0xff]   ;;  %v584_v13 = vmul.f32 %v5896_v22, %v548_v10  ;;  %v585_v43 = vmul.f32 %v5899_v23, %v548_v10 }
 0x26f   : > { %4465 = vmatmul.mubr.msk.f32.vlgmr.msra.gmra.mrb[0].mxu0 %vm1018_vm0, %v5953_v41  ;;  %4842 = vmatmul.mubr.msk.f32.vlgmr.msra.gmra.mrb[0].mxu1 %vm1018_vm0, %v6070_v6  ;;  %v4992_v41 = vld [vmem:[#allocation5 + $0x60] ss:$24 sps:$4 sm:$0xff]   ;;  %v5036_v31 = vld [vmem:[#allocation5 + $0x214] ss:$24 sps:$4 sm:$0xff]   ;;  %v5034_v18 = vld [vmem:[#allocation5 + $0x210] ss:$24 sps:$4 sm:$0xff]  }
 0x270   : > { %1095 = vmatprep.mubr.f32.mxu0 %v5638_v42  ;;  %2080 = vmatpush1.bf16.msra.mxu0 %v4986_v1  ;;  %v5042_v63 = vld [vmem:[#allocation5 + $0x244] ss:$24 sps:$4 sm:$0xff]   ;;  %v5040_v33 = vld [vmem:[#allocation5 + $0x240] ss:$24 sps:$4 sm:$0xff]  }
 0x271   : > { %2081 = vmatprep.subr.bf16.mxu0 %v4991_v9  ;;  %2123 = vmatpush1.bf16.msra.mxu1 %v5007_v39  ;;  %v553_v51 = vpop.permute.xlu1 %552  ;;  %v5045_v50 = vld [vmem:[#allocation5 + $0x424] ss:$24 sps:$4 sm:$0xff]   ;;  %v5043_v1 = vld [vmem:[#allocation5 + $0x420] ss:$24 sps:$4 sm:$0xff]   ;;  %v5048_v9 = vld [vmem:[#allocation5 + $0x274] ss:$24 sps:$4 sm:$0xff]  }
 0x272   : > { %2124 = vmatprep.subr.bf16.mxu1 %v5015_v52  ;;  %2154 = vmatprep.mubr.bf16.mxu1 %v5636_v2  ;;  %v5046_v39 = vld [vmem:[#allocation5 + $0x270] ss:$24 sps:$4 sm:$0xff]   ;;  %v586_v52 = vmul.f32 %v5896_v22, %v553_v51 }
 0x273   : > { %4466 = vmatmul.mubr.msk.f32.gmra.mrb[2].mxu0 %vm1018_vm0, %v6070_v6 }
 0x274   : > { %2082 = vmatpush1.bf16.msra.mxu0 %v4989_v34  ;;  %v587_v34 = vmul.f32 %v5899_v23, %v553_v51 }
 0x275   : > { %2083 = vmatprep.subr.bf16.mxu0 %v4994_v53  ;;  %2125 = vmatpush1.bf16.msra.mxu1 %v5013_v55  ;;  %v594_v35 = vpop.permute.xlu1 %593 }
 0x276   : > { %2126 = vmatprep.subr.bf16.mxu1 %v5021_v56  ;;  %v626_v44 = vmul.f32 %v5890_v19, %v594_v35  ;;  %v627_v45 = vmul.f32 %v5893_v20, %v594_v35 }
 0x278   : > { %2084 = vmatpush1.bf16.msra.mxu0 %v4992_v41  ;;  %v634_v55 = vadd.f32 %v626_v44, %v584_v13  ;;  %v635_v56 = vadd.f32 %v627_v45, %v585_v43 }
 0x279   : > { %2085 = vmatprep.subr.bf16.mxu0 %v4997_v17  ;;  %2127 = vmatpush1.bf16.msra.mxu1 %v5019_v59  ;;  %v598_v38 = vpop.permute.xlu1 %597 }
 0x27a   : > { %2128 = vmatprep.subr.bf16.mxu1 %v5027_v57  ;;  %v628_v41 = vmul.f32 %v5890_v19, %v598_v38  ;;  %v629_v17 = vmul.f32 %v5893_v20, %v598_v38  ;;  %v5057_v19 = vld [vmem:[#allocation5 + $0xc] ss:$24 sps:$4 sm:$0xff]   ;;  %v1015_v38 = vmul.f32 %v6082_v47, %v6065_v49 }
 0x27c   : > { %2086 = vmatpush1.bf16.msra.mxu0 %v4995_v4  ;;  %v5051_v4 = vld [vmem:[#allocation5 + $0x454] ss:$24 sps:$4 sm:$0xff]   ;;  %v636_v22 = vadd.f32 %v628_v41, %v586_v52 }
 0x27d   : > { %2087 = vmatprep.subr.bf16.mxu0 %v5000_v60  ;;  %2129 = vmatpush1.bf16.msra.mxu1 %v5025_v62  ;;  %v644_v53 = vpop.permute.xlu1 %643  ;;  %v637_v60 = vadd.f32 %v629_v17, %v587_v34  ;;  %v5055_v34 = vld [vmem:[#allocation5 + $0x8] ss:$24 sps:$4 sm:$0xff]  }
 0x27e   : > { %2130 = vmatprep.subr.bf16.mxu1 %v5033_v0  ;;  %v676_v59 = vmul.f32 %v5913_v36, %v644_v53  ;;  %v677_v57 = vmul.f32 %v5916_v37, %v644_v53  ;;  %v5049_v0 = vld [vmem:[#allocation5 + $0x450] ss:$24 sps:$4 sm:$0xff]  }
 0x280   : > { %2088 = vmatpush1.bf16.msra.mxu0 %v4998_v3  ;;  %v684_v23 = vadd.f32 %v676_v59, %v634_v55  ;;  %v685_v62 = vadd.f32 %v677_v57, %v635_v56  ;;  %v5054_v3 = vld [vmem:[#allocation5 + $0x2a4] ss:$24 sps:$4 sm:$0xff]   ;;  %v5061_v57 = vld [vmem:[#allocation5 + $0x38] ss:$24 sps:$4 sm:$0xff]  }
 0x281   : > { %2089 = vmatprep.subr.bf16.mxu0 %v5003_v11  ;;  %2131 = vmatpush1.bf16.msra.mxu1 %v5031_v12  ;;  %v648_v11 = vpop.permute.xlu1 %647  ;;  %v5052_v12 = vld [vmem:[#allocation5 + $0x2a0] ss:$24 sps:$4 sm:$0xff]   ;;  %v5063_v56 = vld [vmem:[#allocation5 + $0x3c] ss:$24 sps:$4 sm:$0xff]  }
 0x282   : > { %2132 = vmatprep.subr.bf16.mxu1 %v5039_v40  ;;  %692 = vst [vmem:[%s5926_s23] sm:$0xff] %v684_v23  ;;  %693 = vst [vmem:[%s5926_s23 + $0x8] sm:$0xff] %v685_v62  ;;  %v678_v20 = vmul.f32 %v5913_v36, %v648_v11  ;;  %v679_v40 = vmul.f32 %v5916_v37, %v648_v11  ;;  %v855_v36 = vld [vmem:[%s6263_s6] sm:$0x7]  ;;  %v5072_v23 = vld [vmem:[#allocation5 + $0x44] ss:$24 sps:$4 sm:$0xff]  }
 0x283   : > { %v1191_v51 = vrot.slane %v855_v36, %v5875_v8  ;;  %v5067_v62 = vld [vmem:[#allocation5 + $0x68] ss:$24 sps:$4 sm:$0xff]   ;;  %v5078_v11 = vld [vmem:[#allocation5 + $0x74] ss:$24 sps:$4 sm:$0xff]  }
 0x284   : > { %2090 = vmatpush1.bf16.msra.mxu0 %v5001_v15  ;;  %v5060_v15 = vld [vmem:[#allocation5 + $0x2d4] ss:$24 sps:$4 sm:$0xff]  }
 0x285   : > { %2091 = vmatprep.subr.bf16.mxu0 %v5006_v21  ;;  %2133 = vmatpush1.bf16.msra.mxu1 %v5037_v24  ;;  %v5058_v21 = vld [vmem:[#allocation5 + $0x2d0] ss:$24 sps:$4 sm:$0xff]   ;;  %v686_v24 = vadd.f32 %v678_v20, %v636_v22  ;;  %v5081_v20 = vld [vmem:[#allocation5 + $0xcc] ss:$24 sps:$4 sm:$0xff]  }
 0x286   : > { %2134 = vmatprep.subr.bf16.mxu1 %v5045_v50  ;;  %v5064_v22 = vld [vmem:[#allocation5 + $0x10] ss:$24 sps:$4 sm:$0xff]  }
 0x287   : > { %694 = vst [vmem:[%s5926_s23 + $0x10] sm:$0xff] %v686_v24  ;;  %v5087_v24 = vld [vmem:[#allocation5 + $0xfc] ss:$24 sps:$4 sm:$0xff]  }
 0x288   : > { %2092 = vmatpush1.bf16.msra.mxu0 %v5004_v26  ;;  %v687_v26 = vadd.f32 %v679_v40, %v637_v60  ;;  %v5069_v60 = vld [vmem:[#allocation5 + $0x6c] ss:$24 sps:$4 sm:$0xff]  }
 0x289   : > { %2093 = vmatprep.subr.bf16.mxu0 %v5012_v61  ;;  %2135 = vmatpush1.bf16.msra.mxu1 %v5043_v1  ;;  %v5066_v61 = vld [vmem:[#allocation5 + $0x14] ss:$24 sps:$4 sm:$0xff]   ;;  %v5084_v40 = vld [vmem:[#allocation5 + $0xa4] ss:$24 sps:$4 sm:$0xff]  }
 0x28a   : > { %2136 = vmatprep.subr.bf16.mxu1 %v5051_v4  ;;  %695 = vst [vmem:[%s5926_s23 + $0x18] sm:$0xff] %v687_v26  ;;  %v5090_v26 = vld [vmem:[#allocation5 + $0xd4] ss:$24 sps:$4 sm:$0xff]  }
 0x28c   : > { %2094 = vmatpush1.bf16.msra.mxu0 %v5010_v27  ;;  %v6100_v27 = vpop.permute.xlu0 %1004 }
 0x28d   : > { %2095 = vmatprep.subr.bf16.mxu0 %v5018_v25  ;;  %2137 = vmatpush1.bf16.msra.mxu1 %v5049_v0  ;;  %v1012_v37 = vmul.f32 %v6100_v27, %v6057_v32  ;;  %v1017_v25 = vmul.f32 %v6082_v47, %v6059_v5  ;;  %v5070_v0 = vld [vmem:[#allocation5 + $0x40] ss:$24 sps:$4 sm:$0xff]  }
 0x28e   : > { %2165 = vmatprep.subr.bf16.mxu1 %v5057_v19  ;;  %v5076_v19 = vld [vmem:[#allocation5 + $0x70] ss:$24 sps:$4 sm:$0xff]  }
 0x290   : > { %2096 = vmatpush1.bf16.msra.mxu0 %v5016_v28  ;;  %v1195_v28 = vrot.slane %v855_v36, %v5886_v16 }
 0x291   : > { %2097 = vmatprep.subr.bf16.mxu0 %v5024_v29 }
 0x294   : > { %2098 = vmatpush1.bf16.msra.mxu0 %v5022_v30 }
 0x295   : > { %2099 = vmatprep.subr.bf16.mxu0 %v5030_v54  ;;  %v1013_v54 = vmul.f32 %v6100_v27, %v6061_v46  ;;  %v1016_v46 = vmul.f32 %v6082_v47, %v6072_v14 }
 0x298   : > { %2100 = vmatpush1.bf16.msra.mxu0 %v5028_v58  ;;  %v1014_v58 = vmul.f32 %v6100_v27, %v6063_v48 }
 0x299   : > { %2101 = vmatprep.subr.bf16.mxu0 %v5036_v31 }
 0x29c   : > { %2102 = vmatpush1.bf16.msra.mxu0 %v5034_v18  ;;  %v1187_v18 = vrot.slane %v855_v36, %v5872_v7  ;;  %v5088_v36 = vld [vmem:[#allocation5 + $0xd0] ss:$24 sps:$4 sm:$0xff]  }
 0x29d   : > { %2103 = vmatprep.subr.bf16.mxu0 %v5042_v63 }
 0x2a0   : > { %2104 = vmatpush1.bf16.msra.mxu0 %v5040_v33 }
 0x2a1   : > { %2105 = vmatprep.subr.bf16.mxu0 %v5048_v9 }
 0x2a4   : > { %2106 = vmatpush1.bf16.msra.mxu0 %v5046_v39 }
 0x2a5   : > { %2107 = vmatprep.subr.bf16.mxu0 %v5054_v3  ;;  %v5075_v3 = vld [vmem:[#allocation5 + $0x9c] ss:$24 sps:$4 sm:$0xff]  }
 0x2a8   : > { %2108 = vmatpush1.bf16.msra.mxu0 %v5052_v12  ;;  %v5073_v12 = vld [vmem:[#allocation5 + $0x98] ss:$24 sps:$4 sm:$0xff]  }
 0x2a9   : > { %2109 = vmatprep.subr.bf16.mxu0 %v5060_v15  ;;  %v5079_v15 = vld [vmem:[#allocation5 + $0xc8] ss:$24 sps:$4 sm:$0xff]  }
 0x2ac   : > { %2110 = vmatpush1.bf16.msra.mxu0 %v5058_v21  ;;  %v5082_v21 = vld [vmem:[#allocation5 + $0xa0] ss:$24 sps:$4 sm:$0xff]  }
 0x2ad   : > { %2251 = vmatprep.subr.bf16.mxu0 %v5066_v61  ;;  %v5085_v61 = vld [vmem:[#allocation5 + $0xf8] ss:$24 sps:$4 sm:$0xff]  }
 0x342   : > { %v1091_v29 = vpop.f32.mrb[0].mxu0  ;;  %v4843_v30 = vpop.f32.mrb[0].mxu1 }
 0x343   : > { %v1177_v31 = vadd.f32 %v1091_v29, %v1012_v37  ;;  %v1182_v63 = vadd.f32 %v4843_v30, %v1017_v25  ;;  %v1093_v33 = vpop.f32.mrb[1].mxu0  ;;  %v1168_v10 = vpop.f32.mrb[1].mxu1  ;;  %v5093_v37 = vld [vmem:[#allocation5 + $0x12c] ss:$24 sps:$4 sm:$0xff]   ;;  %v5094_v29 = vld [vmem:[#allocation5 + $0x100] ss:$24 sps:$4 sm:$0xff]  }
 0x344   : > { %v1178_v32 = vadd.f32 %v1093_v33, %v1013_v54  ;;  %v1179_v5 = vadd.f32 %v1168_v10, %v1014_v58  ;;  %v5096_v25 = vld [vmem:[#allocation5 + $0x104] ss:$24 sps:$4 sm:$0xff]   ;;  %v5102_v54 = vld [vmem:[#allocation5 + $0x134] ss:$24 sps:$4 sm:$0xff]   ;;  %v5097_v58 = vld [vmem:[#allocation5 + $0x158] ss:$24 sps:$4 sm:$0xff]  }
 0x345   : > { %v1204_v35 = vadd.f32 %v1195_v28, %v1182_v63  ;;  %v1199_v48 = vadd.f32 %v1187_v18, %v1177_v31  ;;  %v5099_v30 = vld [vmem:[#allocation5 + $0x15c] ss:$24 sps:$4 sm:$0xff]   ;;  %v5100_v31 = vld [vmem:[#allocation5 + $0x130] ss:$24 sps:$4 sm:$0xff]   ;;  %v5106_v10 = vld [vmem:[#allocation5 + $0x160] ss:$24 sps:$4 sm:$0xff]  }
 0x346   : > { %v1201_v13 = vadd.f32 %v1195_v28, %v1179_v5  ;;  %v1097_v43 = vpop.f32.mrb[2].mxu0  ;;  %v1200_v1 = vadd.f32 %v1191_v51, %v1178_v32  ;;  %v5091_v28 = vld [vmem:[#allocation5 + $0x128] ss:$24 sps:$4 sm:$0xff]   ;;  %v5108_v63 = vld [vmem:[#allocation5 + $0x164] ss:$24 sps:$4 sm:$0xff]  }
 0x347   : > { %v1210_v44 = vmax.f32 %v1204_v35, 0.0  ;;  %v1180_v45 = vadd.f32 %v1097_v43, %v1015_v38  ;;  %v1099_v50 = vpop.f32.mrb[3].mxu0  ;;  %v1205_v41 = vmax.f32 %v1199_v48, 0.0  ;;  %v5103_v33 = vld [vmem:[#allocation5 + $0x188] ss:$24 sps:$4 sm:$0xff]  }
 0x348   : > { %v1207_v9 = vmax.f32 %v1201_v13, 0.0  ;;  %v1181_v39 = vadd.f32 %v1099_v50, %v1016_v46  ;;  %v1206_v17 = vmax.f32 %v1200_v1, 0.0  ;;  %v5111_v32 = vld [vmem:[#allocation5 + $0x1bc] ss:$24 sps:$4 sm:$0xff]   ;;  %v5109_v5 = vld [vmem:[#allocation5 + $0x1b8] ss:$24 sps:$4 sm:$0xff]  }
 0x349   : > { %v1202_v52 = vadd.f32 %v1187_v18, %v1180_v45  ;;  %v5105_v18 = vld [vmem:[#allocation5 + $0x18c] ss:$24 sps:$4 sm:$0xff]   ;;  %v5112_v35 = vld [vmem:[#allocation5 + $0x190] ss:$24 sps:$4 sm:$0xff]   ;;  %v5118_v46 = vld [vmem:[#allocation5 + $0x1c0] ss:$24 sps:$4 sm:$0xff]  }
 0x34a   : > { %v6120_v53 = vpack.c.bf16 %v1210_v44, %v1207_v9  ;;  %v1203_v55 = vadd.f32 %v1191_v51, %v1181_v39  ;;  %v5114_v51 = vld [vmem:[#allocation5 + $0x194] ss:$24 sps:$4 sm:$0xff]   ;;  %v5120_v13 = vld [vmem:[#allocation5 + $0x1c4] ss:$24 sps:$4 sm:$0xff]   ;;  %v5115_v43 = vld [vmem:[#allocation5 + $0x1e8] ss:$24 sps:$4 sm:$0xff]  }
 0x34b   : > { %v1208_v49 = vmax.f32 %v1202_v52, 0.0  ;;  %v5117_v38 = vld [vmem:[#allocation5 + $0x1ec] ss:$24 sps:$4 sm:$0xff]   ;;  %v5123_v48 = vld [vmem:[#allocation5 + $0x21c] ss:$24 sps:$4 sm:$0xff]  }
 0x34c   : > { %v1209_v59 = vmax.f32 %v1203_v55, 0.0  ;;  %2155 = vmatmul.mubr.bf16.vlgmr.msra.gmra.mrb[4].mxu1 %v6120_v53  ;;  %v5126_v44 = vld [vmem:[#allocation5 + $0x1f4] ss:$24 sps:$4 sm:$0xff]   ;;  %v5121_v45 = vld [vmem:[#allocation5 + $0x218] ss:$24 sps:$4 sm:$0xff]  }
 0x34d   : > { %v6123_v14 = vpack.c.bf16 %v1208_v49, %v1205_v41  ;;  %2166 = vmatpush1.bf16.msra.mxu1 %v5055_v34  ;;  %v5124_v50 = vld [vmem:[#allocation5 + $0x1f0] ss:$24 sps:$4 sm:$0xff]   ;;  %v5129_v1 = vld [vmem:[#allocation5 + $0x24c] ss:$24 sps:$4 sm:$0xff]   ;;  %v5130_v52 = vld [vmem:[#allocation5 + $0x220] ss:$24 sps:$4 sm:$0xff]  }
 0x34e   : > { %2167 = vmatprep.subr.bf16.mxu1 %v5063_v56  ;;  %v1357_v4 = vpack.c.bf16 %v1209_v59, %v1206_v17  ;;  %v5132_v9 = vld [vmem:[#allocation5 + $0x224] ss:$24 sps:$4 sm:$0xff]   ;;  %v5127_v39 = vld [vmem:[#allocation5 + $0x248] ss:$24 sps:$4 sm:$0xff]   ;;  %v5138_v55 = vld [vmem:[#allocation5 + $0x254] ss:$24 sps:$4 sm:$0xff]  }
 0x34f   : > { %v5135_v34 = vld [vmem:[#allocation5 + $0x27c] ss:$24 sps:$4 sm:$0xff]   ;;  %v5133_v56 = vld [vmem:[#allocation5 + $0x278] ss:$24 sps:$4 sm:$0xff]   ;;  %v5141_v49 = vld [vmem:[#allocation5 + $0x2ac] ss:$24 sps:$4 sm:$0xff]  }
 0x350   : > { %2111 = vmatprep.mubr.bf16.mxu0 %v1357_v4  ;;  %2197 = vmatprep.mubr.bf16.mxu1 %v1357_v4  ;;  %v5136_v41 = vld [vmem:[#allocation5 + $0x250] ss:$24 sps:$4 sm:$0xff]   ;;  %v5144_v17 = vld [vmem:[#allocation5 + $0x284] ss:$24 sps:$4 sm:$0xff]  }
 0x351   : > { %2168 = vmatpush1.bf16.msra.mxu1 %v5061_v57  ;;  %2112 = vmatmul.mubr.bf16.vlgmr.msra.gmra.mrb[4].mxu0 %v6123_v14  ;;  %v5139_v59 = vld [vmem:[#allocation5 + $0x2a8] ss:$24 sps:$4 sm:$0xff]  }
 0x352   : > { %2252 = vmatpush1.bf16.msra.mxu0 %v5064_v22  ;;  %2283 = vmatprep.mubr.bf16.mxu0 %v1357_v4  ;;  %v5142_v57 = vld [vmem:[#allocation5 + $0x280] ss:$24 sps:$4 sm:$0xff]   ;;  %v5147_v4 = vld [vmem:[#allocation5 + $0x2dc] ss:$24 sps:$4 sm:$0xff]  }
 0x353   : > { %2169 = vmatprep.subr.bf16.mxu1 %v5069_v60  ;;  %2253 = vmatprep.subr.bf16.mxu0 %v5072_v23  ;;  %v5150_v22 = vld [vmem:[#allocation5 + $0x2b4] ss:$24 sps:$4 sm:$0xff]   ;;  %v5145_v60 = vld [vmem:[#allocation5 + $0x2d8] ss:$24 sps:$4 sm:$0xff]  }
 0x354   : > { %v5148_v23 = vld [vmem:[#allocation5 + $0x2b0] ss:$24 sps:$4 sm:$0xff]  }
 0x355   : > { %2170 = vmatpush1.bf16.msra.mxu1 %v5067_v62  ;;  %v5153_v62 = vld [vmem:[#allocation5 + $0x30c] ss:$24 sps:$4 sm:$0xff]  }
 0x356   : > { %2254 = vmatpush1.bf16.msra.mxu0 %v5070_v0  ;;  %2171 = vmatprep.subr.bf16.mxu1 %v5075_v3  ;;  %v5156_v0 = vld [vmem:[#allocation5 + $0x2e4] ss:$24 sps:$4 sm:$0xff]   ;;  %v5151_v3 = vld [vmem:[#allocation5 + $0x308] ss:$24 sps:$4 sm:$0xff]  }
 0x357   : > { %2255 = vmatprep.subr.bf16.mxu0 %v5078_v11  ;;  %v5154_v11 = vld [vmem:[#allocation5 + $0x2e0] ss:$24 sps:$4 sm:$0xff]  }
 0x359   : > { %2172 = vmatpush1.bf16.msra.mxu1 %v5073_v12  ;;  %v5159_v12 = vld [vmem:[#allocation5 + $0x33c] ss:$24 sps:$4 sm:$0xff]  }
 0x35a   : > { %2256 = vmatpush1.bf16.msra.mxu0 %v5076_v19  ;;  %2173 = vmatprep.subr.bf16.mxu1 %v5081_v20  ;;  %v5162_v19 = vld [vmem:[#allocation5 + $0x314] ss:$24 sps:$4 sm:$0xff]   ;;  %v5157_v20 = vld [vmem:[#allocation5 + $0x338] ss:$24 sps:$4 sm:$0xff]  }
 0x35b   : > { %2257 = vmatprep.subr.bf16.mxu0 %v5084_v40  ;;  %v5160_v40 = vld [vmem:[#allocation5 + $0x310] ss:$24 sps:$4 sm:$0xff]  }
 0x35d   : > { %2174 = vmatpush1.bf16.msra.mxu1 %v5079_v15  ;;  %v5165_v15 = vld [vmem:[#allocation5 + $0x36c] ss:$24 sps:$4 sm:$0xff]  }
 0x35e   : > { %2258 = vmatpush1.bf16.msra.mxu0 %v5082_v21  ;;  %2175 = vmatprep.subr.bf16.mxu1 %v5087_v24  ;;  %v5168_v21 = vld [vmem:[#allocation5 + $0x344] ss:$24 sps:$4 sm:$0xff]   ;;  %v5163_v24 = vld [vmem:[#allocation5 + $0x368] ss:$24 sps:$4 sm:$0xff]  }
 0x35f   : > { %2259 = vmatprep.subr.bf16.mxu0 %v5090_v26  ;;  %v5166_v26 = vld [vmem:[#allocation5 + $0x340] ss:$24 sps:$4 sm:$0xff]  }
 0x361   : > { %2176 = vmatpush1.bf16.msra.mxu1 %v5085_v61  ;;  %v5171_v61 = vld [vmem:[#allocation5 + $0x39c] ss:$24 sps:$4 sm:$0xff]  }
 0x362   : > { %2260 = vmatpush1.bf16.msra.mxu0 %v5088_v36  ;;  %2177 = vmatprep.subr.bf16.mxu1 %v5093_v37  ;;  %v5174_v36 = vld [vmem:[#allocation5 + $0x374] ss:$24 sps:$4 sm:$0xff]   ;;  %v5169_v37 = vld [vmem:[#allocation5 + $0x398] ss:$24 sps:$4 sm:$0xff]  }
 0x363   : > { %2261 = vmatprep.subr.bf16.mxu0 %v5096_v25  ;;  %v5172_v25 = vld [vmem:[#allocation5 + $0x370] ss:$24 sps:$4 sm:$0xff]  }
 0x365   : > { %2178 = vmatpush1.bf16.msra.mxu1 %v5091_v28  ;;  %v5177_v28 = vld [vmem:[#allocation5 + $0x3cc] ss:$24 sps:$4 sm:$0xff]  }
 0x366   : > { %2262 = vmatpush1.bf16.msra.mxu0 %v5094_v29  ;;  %2179 = vmatprep.subr.bf16.mxu1 %v5099_v30  ;;  %v5180_v29 = vld [vmem:[#allocation5 + $0x3a4] ss:$24 sps:$4 sm:$0xff]   ;;  %v5175_v30 = vld [vmem:[#allocation5 + $0x3c8] ss:$24 sps:$4 sm:$0xff]  }
 0x367   : > { %2263 = vmatprep.subr.bf16.mxu0 %v5102_v54  ;;  %v5183_v54 = vld [vmem:[#allocation5 + $0x3fc] ss:$24 sps:$4 sm:$0xff]  }
 0x369   : > { %2180 = vmatpush1.bf16.msra.mxu1 %v5097_v58  ;;  %v5186_v58 = vld [vmem:[#allocation5 + $0x3d4] ss:$24 sps:$4 sm:$0xff]  }
 0x36a   : > { %2264 = vmatpush1.bf16.msra.mxu0 %v5100_v31  ;;  %2181 = vmatprep.subr.bf16.mxu1 %v5105_v18  ;;  %v5181_v31 = vld [vmem:[#allocation5 + $0x3f8] ss:$24 sps:$4 sm:$0xff]  }
 0x36b   : > { %2265 = vmatprep.subr.bf16.mxu0 %v5108_v63  ;;  %v5184_v18 = vld [vmem:[#allocation5 + $0x3d0] ss:$24 sps:$4 sm:$0xff]   ;;  %v5189_v63 = vld [vmem:[#allocation5 + $0x42c] ss:$24 sps:$4 sm:$0xff]  }
 0x36d   : > { %2182 = vmatpush1.bf16.msra.mxu1 %v5103_v33  ;;  %v5192_v33 = vld [vmem:[#allocation5 + $0x404] ss:$24 sps:$4 sm:$0xff]  }
 0x36e   : > { %2266 = vmatpush1.bf16.msra.mxu0 %v5106_v10  ;;  %2183 = vmatprep.subr.bf16.mxu1 %v5111_v32  ;;  %v5187_v10 = vld [vmem:[#allocation5 + $0x428] ss:$24 sps:$4 sm:$0xff]  }
 0x36f   : > { %2267 = vmatprep.subr.bf16.mxu0 %v5114_v51  ;;  %v5190_v32 = vld [vmem:[#allocation5 + $0x400] ss:$24 sps:$4 sm:$0xff]   ;;  %v5195_v51 = vld [vmem:[#allocation5 + $0x45c] ss:$24 sps:$4 sm:$0xff]  }
 0x371   : > { %2184 = vmatpush1.bf16.msra.mxu1 %v5109_v5  ;;  %v5198_v5 = vld [vmem:[#allocation5 + $0x434] ss:$24 sps:$4 sm:$0xff]  }
 0x372   : > { %2268 = vmatpush1.bf16.msra.mxu0 %v5112_v35  ;;  %2185 = vmatprep.subr.bf16.mxu1 %v5117_v38  ;;  %v5193_v35 = vld [vmem:[#allocation5 + $0x458] ss:$24 sps:$4 sm:$0xff]  }
 0x373   : > { %2269 = vmatprep.subr.bf16.mxu0 %v5120_v13  ;;  %v5196_v38 = vld [vmem:[#allocation5 + $0x430] ss:$24 sps:$4 sm:$0xff]   ;;  %v5201_v13 = vld [vmem:[#allocation5 + $0x464] ss:$24 sps:$4 sm:$0xff]  }
 0x375   : > { %2186 = vmatpush1.bf16.msra.mxu1 %v5115_v43  ;;  %v5199_v43 = vld [vmem:[#allocation5 + $0x460] ss:$24 sps:$4 sm:$0xff]  }
 0x376   : > { %2270 = vmatpush1.bf16.msra.mxu0 %v5118_v46  ;;  %2187 = vmatprep.subr.bf16.mxu1 %v5123_v48  ;;  %v5205_v46 = vld [vmem:[#allocation6 + $0x8] ss:$24 sps:$4 sm:$0xff]   ;;  %v5207_v48 = vld [vmem:[#allocation6 + $0xc] ss:$24 sps:$4 sm:$0xff]  }
 0x377   : > { %2271 = vmatprep.subr.bf16.mxu0 %v5126_v44  ;;  %v5213_v44 = vld [vmem:[#allocation6 + $0x3c] ss:$24 sps:$4 sm:$0xff]  }
 0x379   : > { %2188 = vmatpush1.bf16.msra.mxu1 %v5121_v45  ;;  %v5211_v45 = vld [vmem:[#allocation6 + $0x38] ss:$24 sps:$4 sm:$0xff]  }
 0x37a   : > { %2272 = vmatpush1.bf16.msra.mxu0 %v5124_v50  ;;  %2189 = vmatprep.subr.bf16.mxu1 %v5129_v1  ;;  %v5219_v50 = vld [vmem:[#allocation6 + $0x6c] ss:$24 sps:$4 sm:$0xff]   ;;  %v5217_v1 = vld [vmem:[#allocation6 + $0x68] ss:$24 sps:$4 sm:$0xff]  }
 0x37b   : > { %2273 = vmatprep.subr.bf16.mxu0 %v5132_v9 }
 0x37d   : > { %2190 = vmatpush1.bf16.msra.mxu1 %v5127_v39  ;;  %v5225_v39 = vld [vmem:[#allocation6 + $0x9c] ss:$24 sps:$4 sm:$0xff]  }
 0x37e   : > { %2274 = vmatpush1.bf16.msra.mxu0 %v5130_v52  ;;  %2191 = vmatprep.subr.bf16.mxu1 %v5135_v34 }
 0x37f   : > { %2275 = vmatprep.subr.bf16.mxu0 %v5138_v55  ;;  %v5223_v55 = vld [vmem:[#allocation6 + $0x98] ss:$24 sps:$4 sm:$0xff]  }
 0x381   : > { %2192 = vmatpush1.bf16.msra.mxu1 %v5133_v56 }
 0x382   : > { %2276 = vmatpush1.bf16.msra.mxu0 %v5136_v41  ;;  %2193 = vmatprep.subr.bf16.mxu1 %v5141_v49 }
 0x383   : > { %2277 = vmatprep.subr.bf16.mxu0 %v5144_v17 }
 0x385   : > { %2194 = vmatpush1.bf16.msra.mxu1 %v5139_v59  ;;  %v5229_v59 = vld [vmem:[#allocation6 + $0xc8] ss:$24 sps:$4 sm:$0xff]  }
 0x386   : > { %2278 = vmatpush1.bf16.msra.mxu0 %v5142_v57  ;;  %2195 = vmatprep.subr.bf16.mxu1 %v5147_v4 }
 0x387   : > { %2279 = vmatprep.subr.bf16.mxu0 %v5150_v22 }
 0x389   : > { %2196 = vmatpush1.bf16.msra.mxu1 %v5145_v60 }
 0x38a   : > { %2280 = vmatpush1.bf16.msra.mxu0 %v5148_v23  ;;  %2208 = vmatprep.subr.bf16.mxu1 %v5153_v62  ;;  %v5237_v23 = vld [vmem:[#allocation6 + $0xfc] ss:$24 sps:$4 sm:$0xff]  }
 0x38b   : > { %2281 = vmatprep.subr.bf16.mxu0 %v5156_v0  ;;  %v5235_v0 = vld [vmem:[#allocation6 + $0xf8] ss:$24 sps:$4 sm:$0xff]  }
 0x38c   : > { %2198 = vmatmul.mubr.bf16.vlgmr.msra.gmra.mrb[8].mxu1 %v6123_v14 }
 0x38d   : > { %2209 = vmatpush1.bf16.msra.mxu1 %v5151_v3  ;;  %2240 = vmatprep.mubr.bf16.mxu1 %v5636_v2  ;;  %v5243_v3 = vld [vmem:[#allocation6 + $0x12c] ss:$24 sps:$4 sm:$0xff]  }
 0x38e   : > { %2282 = vmatpush1.bf16.msra.mxu0 %v5154_v11  ;;  %2210 = vmatprep.subr.bf16.mxu1 %v5159_v12  ;;  %v5241_v11 = vld [vmem:[#allocation6 + $0x128] ss:$24 sps:$4 sm:$0xff]   ;;  %v5249_v12 = vld [vmem:[#allocation6 + $0x15c] ss:$24 sps:$4 sm:$0xff]  }
 0x38f   : > { %2294 = vmatprep.subr.bf16.mxu0 %v5162_v19  ;;  %v5247_v19 = vld [vmem:[#allocation6 + $0x158] ss:$24 sps:$4 sm:$0xff]  }
 0x391   : > { %2211 = vmatpush1.bf16.msra.mxu1 %v5157_v20  ;;  %2284 = vmatmul.mubr.bf16.vlgmr.msra.gmra.mrb[8].mxu0 %v6123_v14  ;;  %v5178_v14 = vld [vmem:[#allocation5 + $0x3a0] ss:$24 sps:$4 sm:$0xff]   ;;  %v5255_v20 = vld [vmem:[#allocation6 + $0x18c] ss:$24 sps:$4 sm:$0xff]  }
 0x392   : > { %2295 = vmatpush1.bf16.msra.mxu0 %v5160_v40  ;;  %2212 = vmatprep.subr.bf16.mxu1 %v5165_v15  ;;  %v5253_v40 = vld [vmem:[#allocation6 + $0x188] ss:$24 sps:$4 sm:$0xff]   ;;  %v5261_v15 = vld [vmem:[#allocation6 + $0x1bc] ss:$24 sps:$4 sm:$0xff]  }
 0x393   : > { %2296 = vmatprep.subr.bf16.mxu0 %v5168_v21  ;;  %2326 = vmatprep.mubr.bf16.mxu0 %v5636_v2  ;;  %v5259_v21 = vld [vmem:[#allocation6 + $0x1b8] ss:$24 sps:$4 sm:$0xff]  }
 0x395   : > { %2213 = vmatpush1.bf16.msra.mxu1 %v5163_v24  ;;  %v5267_v24 = vld [vmem:[#allocation6 + $0x1ec] ss:$24 sps:$4 sm:$0xff]  }
 0x396   : > { %2297 = vmatpush1.bf16.msra.mxu0 %v5166_v26  ;;  %2214 = vmatprep.subr.bf16.mxu1 %v5171_v61  ;;  %v5265_v26 = vld [vmem:[#allocation6 + $0x1e8] ss:$24 sps:$4 sm:$0xff]   ;;  %v5273_v61 = vld [vmem:[#allocation6 + $0x21c] ss:$24 sps:$4 sm:$0xff]  }
 0x397   : > { %2298 = vmatprep.subr.bf16.mxu0 %v5174_v36  ;;  %v5271_v36 = vld [vmem:[#allocation6 + $0x218] ss:$24 sps:$4 sm:$0xff]  }
 0x399   : > { %2215 = vmatpush1.bf16.msra.mxu1 %v5169_v37  ;;  %v5279_v37 = vld [vmem:[#allocation6 + $0x24c] ss:$24 sps:$4 sm:$0xff]  }
 0x39a   : > { %2299 = vmatpush1.bf16.msra.mxu0 %v5172_v25  ;;  %2216 = vmatprep.subr.bf16.mxu1 %v5177_v28  ;;  %v5277_v25 = vld [vmem:[#allocation6 + $0x248] ss:$24 sps:$4 sm:$0xff]  }
 0x39b   : > { %2300 = vmatprep.subr.bf16.mxu0 %v5180_v29 }
 0x39d   : > { %2217 = vmatpush1.bf16.msra.mxu1 %v5175_v30 }
 0x39e   : > { %2301 = vmatpush1.bf16.msra.mxu0 %v5178_v14  ;;  %2218 = vmatprep.subr.bf16.mxu1 %v5183_v54 }
 0x39f   : > { %2302 = vmatprep.subr.bf16.mxu0 %v5186_v58 }
 0x3a1   : > { %2219 = vmatpush1.bf16.msra.mxu1 %v5181_v31 }
 0x3a2   : > { %2303 = vmatpush1.bf16.msra.mxu0 %v5184_v18  ;;  %2220 = vmatprep.subr.bf16.mxu1 %v5189_v63 }
 0x3a3   : > { %2304 = vmatprep.subr.bf16.mxu0 %v5192_v33 }
 0x3a5   : > { %2221 = vmatpush1.bf16.msra.mxu1 %v5187_v10 }
 0x3a6   : > { %2305 = vmatpush1.bf16.msra.mxu0 %v5190_v32  ;;  %2222 = vmatprep.subr.bf16.mxu1 %v5195_v51  ;;  %v5204_v32 = vld [vmem:[#allocation6 + $0x4] ss:$24 sps:$4 sm:$0xff]  }
 0x3a7   : > { %2306 = vmatprep.subr.bf16.mxu0 %v5198_v5  ;;  %v6148_v51 = vld [vmem:[%s6261_s4] sm:$0xff] }
 0x3a8   : > { %v5202_v5 = vld [vmem:[#allocation6] ss:$24 sps:$4 sm:$0xff]  }
 0x3a9   : > { %2223 = vmatpush1.bf16.msra.mxu1 %v5193_v35  ;;  %v5210_v35 = vld [vmem:[#allocation6 + $0x34] ss:$24 sps:$4 sm:$0xff]  }
 0x3aa   : > { %2307 = vmatpush1.bf16.msra.mxu0 %v5196_v38  ;;  %v5208_v38 = vld [vmem:[#allocation6 + $0x30] ss:$24 sps:$4 sm:$0xff]  }
 0x3ab   : > { %2308 = vmatprep.subr.bf16.mxu0 %v5201_v13  ;;  %v5216_v13 = vld [vmem:[#allocation6 + $0x64] ss:$24 sps:$4 sm:$0xff]  }
 0x3ac   : > { %2241 = vmatmul.mubr.bf16.vlgmr.msra.gmra.mrb[8].mxu1 %v6120_v53 }
 0x3ad   : > { %2407 = vmatprep.mubr.f32.mxu1 %v5638_v42 }
 0x3ae   : > { %2309 = vmatpush1.bf16.msra.mxu0 %v5199_v43  ;;  %v5214_v43 = vld [vmem:[#allocation6 + $0x60] ss:$24 sps:$4 sm:$0xff]  }
 0x3af   : > { %3483 = vmatprep.subr.bf16.mxu0 %v5207_v48  ;;  %v5220_v48 = vld [vmem:[#allocation6 + $0x90] ss:$24 sps:$4 sm:$0xff]  }
 0x3b1   : > { %2327 = vmatmul.mubr.bf16.vlgmr.msra.gmra.mrb[8].mxu0 %v6120_v53  ;;  %v5231_v53 = vld [vmem:[#allocation6 + $0xcc] ss:$24 sps:$4 sm:$0xff]  }
 0x3b2   : > { %3484 = vmatpush1.bf16.msra.mxu0 %v5205_v46  ;;  %v5222_v46 = vld [vmem:[#allocation6 + $0x94] ss:$24 sps:$4 sm:$0xff]  }
 0x3b3   : > { %3485 = vmatprep.subr.bf16.mxu0 %v5213_v44  ;;  %v5228_v44 = vld [vmem:[#allocation6 + $0xc4] ss:$24 sps:$4 sm:$0xff]  }
 0x3b6   : > { %3486 = vmatpush1.bf16.msra.mxu0 %v5211_v45  ;;  %v5226_v45 = vld [vmem:[#allocation6 + $0xc0] ss:$24 sps:$4 sm:$0xff]  }
 0x3b7   : > { %3487 = vmatprep.subr.bf16.mxu0 %v5219_v50  ;;  %v5234_v50 = vld [vmem:[#allocation6 + $0xf4] ss:$24 sps:$4 sm:$0xff]  }
 0x3ba   : > { %3488 = vmatpush1.bf16.msra.mxu0 %v5217_v1  ;;  %v5232_v1 = vld [vmem:[#allocation6 + $0xf0] ss:$24 sps:$4 sm:$0xff]  }
 0x3bb   : > { %3489 = vmatprep.subr.bf16.mxu0 %v5225_v39  ;;  %v5246_v39 = vld [vmem:[#allocation6 + $0x154] ss:$24 sps:$4 sm:$0xff]  }
 0x3be   : > { %3490 = vmatpush1.bf16.msra.mxu0 %v5223_v55  ;;  %v5250_v55 = vld [vmem:[#allocation6 + $0x180] ss:$24 sps:$4 sm:$0xff]  }
 0x3bf   : > { %3491 = vmatprep.subr.bf16.mxu0 %v5231_v53  ;;  %v5256_v53 = vld [vmem:[#allocation6 + $0x1b0] ss:$24 sps:$4 sm:$0xff]  }
 0x3c2   : > { %3492 = vmatpush1.bf16.msra.mxu0 %v5229_v59  ;;  %v5270_v59 = vld [vmem:[#allocation6 + $0x214] ss:$24 sps:$4 sm:$0xff]  }
 0x3c3   : > { %3493 = vmatprep.subr.bf16.mxu0 %v5237_v23  ;;  %v5274_v23 = vld [vmem:[#allocation6 + $0x240] ss:$24 sps:$4 sm:$0xff]  }
 0x3c6   : > { %3494 = vmatpush1.bf16.msra.mxu0 %v5235_v0  ;;  %v5282_v0 = vld [vmem:[#allocation6 + $0x274] ss:$24 sps:$4 sm:$0xff]  }
 0x3c7   : > { %3495 = vmatprep.subr.bf16.mxu0 %v5243_v3  ;;  %v5285_v3 = vld [vmem:[#allocation6 + $0x27c] ss:$24 sps:$4 sm:$0xff]  }
 0x3ca   : > { %3496 = vmatpush1.bf16.msra.mxu0 %v5241_v11  ;;  %v5280_v11 = vld [vmem:[#allocation6 + $0x270] ss:$24 sps:$4 sm:$0xff]  }
 0x3cb   : > { %3497 = vmatprep.subr.bf16.mxu0 %v5249_v12  ;;  %v5283_v12 = vld [vmem:[#allocation6 + $0x278] ss:$24 sps:$4 sm:$0xff]  }
 0x3ce   : > { %3498 = vmatpush1.bf16.msra.mxu0 %v5247_v19  ;;  %v5288_v19 = vld [vmem:[#allocation6 + $0x2a4] ss:$24 sps:$4 sm:$0xff]  }
 0x3cf   : > { %3499 = vmatprep.subr.bf16.mxu0 %v5255_v20  ;;  %v5291_v20 = vld [vmem:[#allocation6 + $0x2ac] ss:$24 sps:$4 sm:$0xff]  }
 0x3d2   : > { %3500 = vmatpush1.bf16.msra.mxu0 %v5253_v40  ;;  %v5286_v40 = vld [vmem:[#allocation6 + $0x2a0] ss:$24 sps:$4 sm:$0xff]  }
 0x3d3   : > { %3501 = vmatprep.subr.bf16.mxu0 %v5261_v15  ;;  %v5289_v15 = vld [vmem:[#allocation6 + $0x2a8] ss:$24 sps:$4 sm:$0xff]  }
 0x3d6   : > { %3502 = vmatpush1.bf16.msra.mxu0 %v5259_v21  ;;  %v5294_v21 = vld [vmem:[#allocation6 + $0x2d4] ss:$24 sps:$4 sm:$0xff]  }
 0x3d7   : > { %3503 = vmatprep.subr.bf16.mxu0 %v5267_v24  ;;  %v5297_v24 = vld [vmem:[#allocation6 + $0x2dc] ss:$24 sps:$4 sm:$0xff]  }
 0x3da   : > { %3504 = vmatpush1.bf16.msra.mxu0 %v5265_v26  ;;  %v5292_v26 = vld [vmem:[#allocation6 + $0x2d0] ss:$24 sps:$4 sm:$0xff]  }
 0x3db   : > { %3505 = vmatprep.subr.bf16.mxu0 %v5273_v61  ;;  %v5295_v61 = vld [vmem:[#allocation6 + $0x2d8] ss:$24 sps:$4 sm:$0xff]  }
 0x3de   : > { %3506 = vmatpush1.bf16.msra.mxu0 %v5271_v36  ;;  %v5300_v36 = vld [vmem:[#allocation6 + $0x304] ss:$24 sps:$4 sm:$0xff]  }
 0x3df   : > { %3507 = vmatprep.subr.bf16.mxu0 %v5279_v37  ;;  %v5303_v37 = vld [vmem:[#allocation6 + $0x30c] ss:$24 sps:$4 sm:$0xff]  }
 0x3e2   : > { %3508 = vmatpush1.bf16.msra.mxu0 %v5277_v25  ;;  %v1355_v25 = vld [vmem:[%s6265_s8] sm:$0x7] }
 0x3e3   : > { %3509 = vmatprep.subr.bf16.mxu0 %v5285_v3  ;;  %v5312_v3 = vld [vmem:[#allocation6 + $0x364] ss:$24 sps:$4 sm:$0xff]  }
 0x3e6   : > { %3510 = vmatpush1.bf16.msra.mxu0 %v5283_v12  ;;  %v5310_v12 = vld [vmem:[#allocation6 + $0x360] ss:$24 sps:$4 sm:$0xff]  }
 0x3e7   : > { %3511 = vmatprep.subr.bf16.mxu0 %v5291_v20  ;;  %v5318_v20 = vld [vmem:[#allocation6 + $0x394] ss:$24 sps:$4 sm:$0xff]  }
 0x3ea   : > { %3512 = vmatpush1.bf16.msra.mxu0 %v5289_v15  ;;  %v5316_v15 = vld [vmem:[#allocation6 + $0x390] ss:$24 sps:$4 sm:$0xff]  }
 0x3eb   : > { %3513 = vmatprep.subr.bf16.mxu0 %v5297_v24  ;;  %v5324_v24 = vld [vmem:[#allocation6 + $0x3c4] ss:$24 sps:$4 sm:$0xff]  }
 0x3ee   : > { %3514 = vmatpush1.bf16.msra.mxu0 %v5295_v61  ;;  %v5322_v61 = vld [vmem:[#allocation6 + $0x3c0] ss:$24 sps:$4 sm:$0xff]  }
 0x3ef   : > { %3526 = vmatprep.subr.bf16.mxu0 %v5303_v37  ;;  %v5330_v37 = vld [vmem:[#allocation6 + $0x3f4] ss:$24 sps:$4 sm:$0xff]  }
 0x41f   : > { %v2156_v9 = vpop.f32.mrb[4].mxu1 }
 0x420   : > { %v2158_v52 = vpop.f32.mrb[5].mxu1 }
 0x421   : > { %v2160_v34 = vpop.f32.mrb[6].mxu1 }
 0x422   : > { %v2162_v56 = vpop.f32.mrb[7].mxu1 }
 0x424   : > { %v2113_v41 = vpop.f32.mrb[4].mxu0 }
 0x425   : > { %v6133_v49 = vadd.f32 %v2156_v9, %v2113_v41  ;;  %v2115_v17 = vpop.f32.mrb[5].mxu0  ;;  %v5238_v9 = vld [vmem:[#allocation6 + $0x120] ss:$24 sps:$4 sm:$0xff]   ;;  %v5264_v41 = vld [vmem:[#allocation6 + $0x1e4] ss:$24 sps:$4 sm:$0xff]  }
 0x426   : > { %v6135_v57 = vadd.f32 %v2158_v52, %v2115_v17  ;;  %v2117_v4 = vpop.f32.mrb[6].mxu0  ;;  %v5244_v52 = vld [vmem:[#allocation6 + $0x150] ss:$24 sps:$4 sm:$0xff]   ;;  %v5262_v17 = vld [vmem:[#allocation6 + $0x1e0] ss:$24 sps:$4 sm:$0xff]  }
 0x427   : > { %v6137_v22 = vadd.f32 %v2160_v34, %v2117_v4  ;;  %v2119_v60 = vpop.f32.mrb[7].mxu0  ;;  %v5252_v34 = vld [vmem:[#allocation6 + $0x184] ss:$24 sps:$4 sm:$0xff]   ;;  %v5268_v4 = vld [vmem:[#allocation6 + $0x210] ss:$24 sps:$4 sm:$0xff]  }
 0x428   : > { %v6139_v62 = vadd.f32 %v2162_v56, %v2119_v60  ;;  %v5258_v56 = vld [vmem:[#allocation6 + $0x1b4] ss:$24 sps:$4 sm:$0xff]   ;;  %v5276_v60 = vld [vmem:[#allocation6 + $0x244] ss:$24 sps:$4 sm:$0xff]  }
 0x47f   : > { %v6141_v28 = vpop.f32.mrb[8].mxu1 }
 0x480   : > { %v2244_v29 = vpop.f32.mrb[9].mxu1 }
 0x481   : > { %v6143_v30 = vpop.f32.mrb[10].mxu1 }
 0x482   : > { %v2248_v14 = vpop.f32.mrb[11].mxu1 }
 0x483   : > { %v4875_v54 = vpack.c.bf16 %v2248_v14, %v2244_v29  ;;  %v2337_v29 = vmul.f32 %v6133_v49, %v6100_v27 }
 0x484   : > { %v2328_v58 = vpop.f32.mrb[8].mxu0 }
 0x485   : > { %v2330_v31 = vpop.f32.mrb[9].mxu0 }
 0x486   : > { %v2332_v18 = vpop.f32.mrb[10].mxu0 }
 0x487   : > { %v4873_v63 = vpack.c.bf16 %v2332_v18, %v2328_v58  ;;  %v2334_v33 = vpop.f32.mrb[11].mxu0 }
 0x488   : > { %v4877_v10 = vpack.c.bf16 %v2334_v33, %v2330_v31  ;;  %v2505_v31 = vrot.slane %v1355_v25, %v5872_v7  ;;  %v2509_v33 = vrot.slane %v1355_v25, %v5875_v8 }
 0x489   : > { %4874 = vmatprep.subr.bf16.mxu1 %v4873_v63 }
 0x48a   : > { %4876 = vmatpush1.bf16.msra.mxu1 %v4875_v54  ;;  %v2338_v54 = vmul.f32 %v6135_v57, %v6100_v27  ;;  %v2342_v57 = vmul.f32 %v6143_v30, %v6082_v47 }
 0x48b   : > { %4878 = vmatprep.subr.bf16.mxu1 %v4877_v10 }
 0x48d   : > { %4613 = vmatmul.mubr.msk.f32.vlgmr.msra.gmra.mrb[2].mxu1 %vm1018_vm0, %v6148_v51 }
 0x48e   : > { %4880 = vmatpush3.bf16.msra.mxu1 %v4877_v10  ;;  %2413 = vmatprep.mubr.f32.mxu1 %v5638_v42  ;;  %v2340_v10 = vmul.f32 %v6137_v22, %v6082_v47 }
 0x48f   : > { %3397 = vmatprep.subr.bf16.mxu1 %v5204_v32 }
 0x491   : > { %4614 = vmatmul.mubr.msk.f32.gmra.mrb[12].mxu1 %vm1018_vm0, %v6070_v6 }
 0x492   : > { %4848 = vmatprep.mubr.msk.f32.mxu1 %vm1018_vm0, %v6148_v51 }
 0x495   : > { %4849 = vmatmul.mubr.msk.f32.vlgmr.msra.gmra.mrb[14].mxu1 %vm1018_vm0, %v6070_v6  ;;  %v5240_v6 = vld [vmem:[#allocation6 + $0x124] ss:$24 sps:$4 sm:$0xff]  }
 0x496   : > { %3398 = vmatpush1.bf16.msra.mxu1 %v5202_v5  ;;  %v2341_v5 = vmul.f32 %v6139_v62, %v6082_v47 }
 0x497   : > { %3399 = vmatprep.subr.bf16.mxu1 %v5210_v35 }
 0x49a   : > { %3400 = vmatpush1.bf16.msra.mxu1 %v5208_v38 }
 0x49b   : > { %3401 = vmatprep.subr.bf16.mxu1 %v5216_v13 }
 0x49e   : > { %3402 = vmatpush1.bf16.msra.mxu1 %v5214_v43 }
 0x49f   : > { %3403 = vmatprep.subr.bf16.mxu1 %v5222_v46 }
 0x4a2   : > { %3404 = vmatpush1.bf16.msra.mxu1 %v5220_v48  ;;  %v2513_v48 = vrot.slane %v1355_v25, %v5886_v16  ;;  %v5333_v25 = vld [vmem:[#allocation6 + $0x3fc] ss:$24 sps:$4 sm:$0xff]  }
 0x4a3   : > { %3405 = vmatprep.subr.bf16.mxu1 %v5228_v44  ;;  %v2339_v44 = vmul.f32 %v6141_v28, %v6100_v27  ;;  %v5309_v28 = vld [vmem:[#allocation6 + $0x33c] ss:$24 sps:$4 sm:$0xff]  }
 0x4a6   : > { %3406 = vmatpush1.bf16.msra.mxu1 %v5226_v45 }
 0x4a7   : > { %3407 = vmatprep.subr.bf16.mxu1 %v5234_v50 }
 0x4aa   : > { %3408 = vmatpush1.bf16.msra.mxu1 %v5232_v1 }
 0x4ab   : > { %3409 = vmatprep.subr.bf16.mxu1 %v5240_v6 }
 0x4ae   : > { %3410 = vmatpush1.bf16.msra.mxu1 %v5238_v9 }
 0x4af   : > { %3411 = vmatprep.subr.bf16.mxu1 %v5246_v39 }
 0x4b2   : > { %3412 = vmatpush1.bf16.msra.mxu1 %v5244_v52 }
 0x4b3   : > { %3413 = vmatprep.subr.bf16.mxu1 %v5252_v34 }
 0x4b6   : > { %3414 = vmatpush1.bf16.msra.mxu1 %v5250_v55 }
 0x4b7   : > { %3415 = vmatprep.subr.bf16.mxu1 %v5258_v56 }
 0x4ba   : > { %3416 = vmatpush1.bf16.msra.mxu1 %v5256_v53  ;;  %v5298_v53 = vld [vmem:[#allocation6 + $0x300] ss:$24 sps:$4 sm:$0xff]  }
 0x4bb   : > { %3417 = vmatprep.subr.bf16.mxu1 %v5264_v41  ;;  %v5301_v41 = vld [vmem:[#allocation6 + $0x308] ss:$24 sps:$4 sm:$0xff]  }
 0x4be   : > { %3418 = vmatpush1.bf16.msra.mxu1 %v5262_v17 }
 0x4bf   : > { %3419 = vmatprep.subr.bf16.mxu1 %v5270_v59  ;;  %v5306_v59 = vld [vmem:[#allocation6 + $0x334] ss:$24 sps:$4 sm:$0xff]  }
 0x4c2   : > { %3420 = vmatpush1.bf16.msra.mxu1 %v5268_v4 }
 0x4c3   : > { %3421 = vmatprep.subr.bf16.mxu1 %v5276_v60 }
 0x4c6   : > { %3422 = vmatpush1.bf16.msra.mxu1 %v5274_v23  ;;  %v5304_v23 = vld [vmem:[#allocation6 + $0x330] ss:$24 sps:$4 sm:$0xff]  }
 0x4c7   : > { %3423 = vmatprep.subr.bf16.mxu1 %v5282_v0  ;;  %v5307_v0 = vld [vmem:[#allocation6 + $0x338] ss:$24 sps:$4 sm:$0xff]  }
 0x4ca   : > { %3424 = vmatpush1.bf16.msra.mxu1 %v5280_v11  ;;  %v5315_v11 = vld [vmem:[#allocation6 + $0x36c] ss:$24 sps:$4 sm:$0xff]  }
 0x4cb   : > { %3425 = vmatprep.subr.bf16.mxu1 %v5288_v19  ;;  %v5313_v19 = vld [vmem:[#allocation6 + $0x368] ss:$24 sps:$4 sm:$0xff]  }
 0x4ce   : > { %3426 = vmatpush1.bf16.msra.mxu1 %v5286_v40  ;;  %v5321_v40 = vld [vmem:[#allocation6 + $0x39c] ss:$24 sps:$4 sm:$0xff]  }
 0x4cf   : > { %3427 = vmatprep.subr.bf16.mxu1 %v5294_v21  ;;  %v5319_v21 = vld [vmem:[#allocation6 + $0x398] ss:$24 sps:$4 sm:$0xff]  }
 0x4d2   : > { %3428 = vmatpush1.bf16.msra.mxu1 %v5292_v26  ;;  %v5327_v26 = vld [vmem:[#allocation6 + $0x3cc] ss:$24 sps:$4 sm:$0xff]  }
 0x4d3   : > { %3440 = vmatprep.subr.bf16.mxu1 %v5300_v36  ;;  %v5325_v36 = vld [vmem:[#allocation6 + $0x3c8] ss:$24 sps:$4 sm:$0xff]  }
 0x560   : > { %v2409_v14 = vpop.f32.mrb[2].mxu1 }
 0x561   : > { %v2495_v58 = vadd.f32 %v2409_v14, %v2337_v29  ;;  %v2411_v18 = vpop.f32.mrb[3].mxu1  ;;  %v5328_v29 = vld [vmem:[#allocation6 + $0x3f0] ss:$24 sps:$4 sm:$0xff]  }
 0x562   : > { %v2496_v63 = vadd.f32 %v2411_v18, %v2338_v54  ;;  %v5331_v14 = vld [vmem:[#allocation6 + $0x3f8] ss:$24 sps:$4 sm:$0xff]   ;;  %v5336_v54 = vld [vmem:[#allocation6 + $0x424] ss:$24 sps:$4 sm:$0xff]   ;;  %v5337_v18 = vld [vmem:[#allocation6 + $0x428] ss:$24 sps:$4 sm:$0xff]  }
 0x563   : > { %v2517_v35 = vadd.f32 %v2505_v31, %v2495_v58  ;;  %v5339_v58 = vld [vmem:[#allocation6 + $0x42c] ss:$24 sps:$4 sm:$0xff]  }
 0x564   : > { %v2415_v32 = vpop.f32.mrb[12].mxu1  ;;  %v2518_v13 = vadd.f32 %v2509_v33, %v2496_v63  ;;  %v5342_v63 = vld [vmem:[#allocation6 + $0x454] ss:$24 sps:$4 sm:$0xff]  }
 0x565   : > { %v2498_v49 = vadd.f32 %v2415_v32, %v2340_v10  ;;  %v2417_v38 = vpop.f32.mrb[13].mxu1  ;;  %v2523_v50 = vmax.f32 %v2517_v35, 0.0  ;;  %v5340_v10 = vld [vmem:[#allocation6 + $0x450] ss:$24 sps:$4 sm:$0xff]  }
 0x566   : > { %v2499_v43 = vadd.f32 %v2417_v38, %v2341_v5  ;;  %v2524_v9 = vmax.f32 %v2518_v13, 0.0  ;;  %v5343_v32 = vld [vmem:[#allocation6 + $0x458] ss:$24 sps:$4 sm:$0xff]   ;;  %v5348_v5 = vld [vmem:[#allocation6 + $0x14] ss:$24 sps:$4 sm:$0xff]  }
 0x567   : > { %v2520_v46 = vadd.f32 %v2505_v31, %v2498_v49  ;;  %v5334_v31 = vld [vmem:[#allocation6 + $0x420] ss:$24 sps:$4 sm:$0xff]   ;;  %v5346_v35 = vld [vmem:[#allocation6 + $0x10] ss:$24 sps:$4 sm:$0xff]   ;;  %v5351_v49 = vld [vmem:[#allocation6 + $0x44] ss:$24 sps:$4 sm:$0xff]  }
 0x568   : > { %v2521_v45 = vadd.f32 %v2509_v33, %v2499_v43  ;;  %v4850_v22 = vpop.f32.mrb[14].mxu1  ;;  %v5345_v33 = vld [vmem:[#allocation6 + $0x45c] ss:$24 sps:$4 sm:$0xff]   ;;  %v5349_v38 = vld [vmem:[#allocation6 + $0x40] ss:$24 sps:$4 sm:$0xff]  }
 0x569   : > { %v2526_v1 = vmax.f32 %v2520_v46, 0.0  ;;  %v2500_v6 = vadd.f32 %v4850_v22, %v2342_v57  ;;  %v2486_v62 = vpop.f32.mrb[15].mxu1  ;;  %v5354_v13 = vld [vmem:[#allocation6 + $0x74] ss:$24 sps:$4 sm:$0xff]   ;;  %v5352_v43 = vld [vmem:[#allocation6 + $0x70] ss:$24 sps:$4 sm:$0xff]  }
 0x56a   : > { %v2527_v39 = vmax.f32 %v2521_v45, 0.0  ;;  %v2497_v52 = vadd.f32 %v2486_v62, %v2339_v44  ;;  %v5357_v57 = vld [vmem:[#allocation6 + $0xa4] ss:$24 sps:$4 sm:$0xff]   ;;  %v5355_v46 = vld [vmem:[#allocation6 + $0xa0] ss:$24 sps:$4 sm:$0xff]  }
 0x56b   : > { %v6177_v34 = vpack.c.bf16 %v2526_v1, %v2523_v50  ;;  %v2522_v55 = vadd.f32 %v2513_v48, %v2500_v6  ;;  %v5358_v44 = vld [vmem:[#allocation6 + $0xd0] ss:$24 sps:$4 sm:$0xff]   ;;  %v5363_v45 = vld [vmem:[#allocation6 + $0x104] ss:$24 sps:$4 sm:$0xff]   ;;  %v5361_v22 = vld [vmem:[#allocation6 + $0x100] ss:$24 sps:$4 sm:$0xff]  }
 0x56c   : > { %v2519_v56 = vadd.f32 %v2513_v48, %v2497_v52  ;;  %v6179_v30 = vpack.c.bf16 %v2527_v39, %v2524_v9  ;;  %v5360_v48 = vld [vmem:[#allocation6 + $0xd4] ss:$24 sps:$4 sm:$0xff]   ;;  %v5364_v1 = vld [vmem:[#allocation6 + $0x130] ss:$24 sps:$4 sm:$0xff]   ;;  %v5369_v6 = vld [vmem:[#allocation6 + $0x164] ss:$24 sps:$4 sm:$0xff]  }
 0x56d   : > { %v2528_v17 = vmax.f32 %v2522_v55, 0.0  ;;  %v5366_v50 = vld [vmem:[#allocation6 + $0x134] ss:$24 sps:$4 sm:$0xff]   ;;  %v5367_v62 = vld [vmem:[#allocation6 + $0x160] ss:$24 sps:$4 sm:$0xff]  }
 0x56e   : > { %v2525_v4 = vmax.f32 %v2519_v56, 0.0  ;;  %3429 = vmatprep.mubr.bf16.mxu1 %v6179_v30  ;;  %3515 = vmatprep.mubr.bf16.mxu0 %v6179_v30  ;;  %v5372_v9 = vld [vmem:[#allocation6 + $0x194] ss:$24 sps:$4 sm:$0xff]   ;;  %v5370_v39 = vld [vmem:[#allocation6 + $0x190] ss:$24 sps:$4 sm:$0xff]  }
 0x56f   : > { %3430 = vmatmul.mubr.bf16.vlgmr.msra.gmra.mrb[16].mxu1 %v6177_v34  ;;  %3516 = vmatmul.mubr.bf16.vlgmr.msra.gmra.mrb[12].mxu0 %v6177_v34  ;;  %v5375_v52 = vld [vmem:[#allocation6 + $0x1c4] ss:$24 sps:$4 sm:$0xff]   ;;  %v5373_v55 = vld [vmem:[#allocation6 + $0x1c0] ss:$24 sps:$4 sm:$0xff]   ;;  %v5378_v56 = vld [vmem:[#allocation6 + $0x1f4] ss:$24 sps:$4 sm:$0xff]  }
 0x570   : > { %v6185_v60 = vpack.c.bf16 %v2528_v17, %v2525_v4  ;;  %3441 = vmatpush1.bf16.msra.mxu1 %v5298_v53  ;;  %3527 = vmatpush1.bf16.msra.mxu0 %v5301_v41  ;;  %v5381_v53 = vld [vmem:[#allocation6 + $0x224] ss:$24 sps:$4 sm:$0xff]   ;;  %v5379_v41 = vld [vmem:[#allocation6 + $0x220] ss:$24 sps:$4 sm:$0xff]   ;;  %v5384_v17 = vld [vmem:[#allocation6 + $0x254] ss:$24 sps:$4 sm:$0xff]  }
 0x571   : > { %3442 = vmatprep.subr.bf16.mxu1 %v5306_v59  ;;  %3528 = vmatprep.subr.bf16.mxu0 %v5309_v28  ;;  %v5382_v59 = vld [vmem:[#allocation6 + $0x250] ss:$24 sps:$4 sm:$0xff]   ;;  %v5387_v28 = vld [vmem:[#allocation6 + $0x284] ss:$24 sps:$4 sm:$0xff]   ;;  %v5385_v4 = vld [vmem:[#allocation6 + $0x280] ss:$24 sps:$4 sm:$0xff]  }
 0x572   : > { %3472 = vmatprep.mubr.bf16.mxu1 %v5636_v2  ;;  %3558 = vmatprep.mubr.bf16.mxu0 %v5636_v2 }
 0x574   : > { %3443 = vmatpush1.bf16.msra.mxu1 %v5304_v23  ;;  %3529 = vmatpush1.bf16.msra.mxu0 %v5307_v0  ;;  %v5390_v23 = vld [vmem:[#allocation6 + $0x2b4] ss:$24 sps:$4 sm:$0xff]   ;;  %v5388_v0 = vld [vmem:[#allocation6 + $0x2b0] ss:$24 sps:$4 sm:$0xff]  }
 0x575   : > { %3444 = vmatprep.subr.bf16.mxu1 %v5312_v3  ;;  %3530 = vmatprep.subr.bf16.mxu0 %v5315_v11  ;;  %v5393_v3 = vld [vmem:[#allocation6 + $0x2e4] ss:$24 sps:$4 sm:$0xff]   ;;  %v5391_v11 = vld [vmem:[#allocation6 + $0x2e0] ss:$24 sps:$4 sm:$0xff]  }
 0x578   : > { %3445 = vmatpush1.bf16.msra.mxu1 %v5310_v12  ;;  %3531 = vmatpush1.bf16.msra.mxu0 %v5313_v19  ;;  %v5396_v12 = vld [vmem:[#allocation6 + $0x314] ss:$24 sps:$4 sm:$0xff]   ;;  %v5394_v19 = vld [vmem:[#allocation6 + $0x310] ss:$24 sps:$4 sm:$0xff]  }
 0x579   : > { %3446 = vmatprep.subr.bf16.mxu1 %v5318_v20  ;;  %3532 = vmatprep.subr.bf16.mxu0 %v5321_v40  ;;  %v5399_v20 = vld [vmem:[#allocation6 + $0x344] ss:$24 sps:$4 sm:$0xff]   ;;  %v5397_v40 = vld [vmem:[#allocation6 + $0x340] ss:$24 sps:$4 sm:$0xff]  }
 0x57c   : > { %3447 = vmatpush1.bf16.msra.mxu1 %v5316_v15  ;;  %3533 = vmatpush1.bf16.msra.mxu0 %v5319_v21  ;;  %v5402_v15 = vld [vmem:[#allocation6 + $0x374] ss:$24 sps:$4 sm:$0xff]   ;;  %v5400_v21 = vld [vmem:[#allocation6 + $0x370] ss:$24 sps:$4 sm:$0xff]  }
 0x57d   : > { %3448 = vmatprep.subr.bf16.mxu1 %v5324_v24  ;;  %3534 = vmatprep.subr.bf16.mxu0 %v5327_v26  ;;  %v5405_v24 = vld [vmem:[#allocation6 + $0x3a4] ss:$24 sps:$4 sm:$0xff]   ;;  %v5403_v26 = vld [vmem:[#allocation6 + $0x3a0] ss:$24 sps:$4 sm:$0xff]  }
 0x580   : > { %3449 = vmatpush1.bf16.msra.mxu1 %v5322_v61  ;;  %3535 = vmatpush1.bf16.msra.mxu0 %v5325_v36  ;;  %v5408_v61 = vld [vmem:[#allocation6 + $0x3d4] ss:$24 sps:$4 sm:$0xff]   ;;  %v5406_v36 = vld [vmem:[#allocation6 + $0x3d0] ss:$24 sps:$4 sm:$0xff]  }
 0x581   : > { %3450 = vmatprep.subr.bf16.mxu1 %v5330_v37  ;;  %3536 = vmatprep.subr.bf16.mxu0 %v5333_v25  ;;  %v5411_v37 = vld [vmem:[#allocation6 + $0x404] ss:$24 sps:$4 sm:$0xff]   ;;  %v5414_v25 = vld [vmem:[#allocation6 + $0x434] ss:$24 sps:$4 sm:$0xff]  }
 0x584   : > { %3451 = vmatpush1.bf16.msra.mxu1 %v5328_v29  ;;  %3537 = vmatpush1.bf16.msra.mxu0 %v5331_v14  ;;  %v5412_v29 = vld [vmem:[#allocation6 + $0x430] ss:$24 sps:$4 sm:$0xff]   ;;  %v5417_v14 = vld [vmem:[#allocation6 + $0x464] ss:$24 sps:$4 sm:$0xff]  }
 0x585   : > { %3452 = vmatprep.subr.bf16.mxu1 %v5336_v54  ;;  %3538 = vmatprep.subr.bf16.mxu0 %v5339_v58  ;;  %v5415_v54 = vld [vmem:[#allocation6 + $0x460] ss:$24 sps:$4 sm:$0xff]  }
 0x586   : > { %v5418_v58 = vld [vmem:[#allocation8] ss:$8 sps:$4 sm:$0xff]  }
 0x588   : > { %3453 = vmatpush1.bf16.msra.mxu1 %v5334_v31  ;;  %3539 = vmatpush1.bf16.msra.mxu0 %v5337_v18  ;;  %v5420_v31 = vld [vmem:[#allocation8 + $0x4] ss:$8 sps:$4 sm:$0xff]   ;;  %v5423_v18 = vld [vmem:[#allocation8 + $0x14] ss:$8 sps:$4 sm:$0xff]  }
 0x589   : > { %3454 = vmatprep.subr.bf16.mxu1 %v5342_v63  ;;  %3540 = vmatprep.subr.bf16.mxu0 %v5345_v33  ;;  %v5421_v63 = vld [vmem:[#allocation8 + $0x10] ss:$8 sps:$4 sm:$0xff]   ;;  %v5426_v33 = vld [vmem:[#allocation8 + $0x24] ss:$8 sps:$4 sm:$0xff]  }
 0x58c   : > { %3455 = vmatpush1.bf16.msra.mxu1 %v5340_v10  ;;  %3541 = vmatpush1.bf16.msra.mxu0 %v5343_v32  ;;  %v5424_v10 = vld [vmem:[#allocation8 + $0x20] ss:$8 sps:$4 sm:$0xff]   ;;  %v5429_v32 = vld [vmem:[#allocation8 + $0x34] ss:$8 sps:$4 sm:$0xff]  }
 0x58d   : > { %3569 = vmatprep.subr.bf16.mxu1 %v5348_v5  ;;  %4139 = vmatprep.subr.bf16.mxu0 %v5420_v31  ;;  %v5427_v5 = vld [vmem:[#allocation8 + $0x30] ss:$8 sps:$4 sm:$0xff]  }
 0x58f   : > { %3473 = vmatmul.mubr.bf16.vlgmr.msra.gmra.mrb[16].mxu1 %v6185_v60  ;;  %3559 = vmatmul.mubr.bf16.vlgmr.msra.gmra.mrb[12].mxu0 %v6185_v60 }
 0x590   : > { %3570 = vmatpush1.bf16.msra.mxu1 %v5346_v35  ;;  %3601 = vmatprep.mubr.bf16.mxu1 %v6179_v30  ;;  %v5376_v30 = vld [vmem:[#allocation6 + $0x1f0] ss:$24 sps:$4 sm:$0xff]   ;;  %v5432_v35 = vld [vmem:[#allocation8 + $0x44] ss:$8 sps:$4 sm:$0xff]  }
 0x591   : > { %3571 = vmatprep.subr.bf16.mxu1 %v5351_v49  ;;  %4140 = vmatpush1.bf16.msra.mxu0 %v5418_v58 }
 0x592   : > { %4141 = vmatprep.subr.bf16.mxu0 %v5423_v18 }
 0x594   : > { %3572 = vmatpush1.bf16.msra.mxu1 %v5349_v38  ;;  %v5430_v38 = vld [vmem:[#allocation8 + $0x40] ss:$8 sps:$4 sm:$0xff]  }
 0x595   : > { %3573 = vmatprep.subr.bf16.mxu1 %v5354_v13  ;;  %4142 = vmatpush1.bf16.msra.mxu0 %v5421_v63 }
 0x596   : > { %4143 = vmatprep.subr.bf16.mxu0 %v5426_v33 }
 0x598   : > { %3574 = vmatpush1.bf16.msra.mxu1 %v5352_v43 }
 0x599   : > { %3575 = vmatprep.subr.bf16.mxu1 %v5357_v57  ;;  %4144 = vmatpush1.bf16.msra.mxu0 %v5424_v10  ;;  %v5435_v57 = vld [vmem:[#allocation8 + $0x54] ss:$8 sps:$4 sm:$0xff]  }
 0x59a   : > { %4145 = vmatprep.subr.bf16.mxu0 %v5429_v32 }
 0x59c   : > { %3576 = vmatpush1.bf16.msra.mxu1 %v5355_v46 }
 0x59d   : > { %3577 = vmatprep.subr.bf16.mxu1 %v5360_v48  ;;  %4146 = vmatpush1.bf16.msra.mxu0 %v5427_v5 }
 0x59e   : > { %4147 = vmatprep.subr.bf16.mxu0 %v5432_v35 }
 0x5a0   : > { %3578 = vmatpush1.bf16.msra.mxu1 %v5358_v44 }
 0x5a1   : > { %3579 = vmatprep.subr.bf16.mxu1 %v5363_v45  ;;  %4148 = vmatpush1.bf16.msra.mxu0 %v5430_v38 }
 0x5a2   : > { %4149 = vmatprep.subr.bf16.mxu0 %v5435_v57 }
 0x5a4   : > { %3580 = vmatpush1.bf16.msra.mxu1 %v5361_v22 }
 0x5a5   : > { %3581 = vmatprep.subr.bf16.mxu1 %v5366_v50  ;;  %v5433_v50 = vld [vmem:[#allocation8 + $0x50] ss:$8 sps:$4 sm:$0xff]  }
 0x5a6   : > { %4150 = vmatpush1.bf16.msra.mxu0 %v5433_v50 }
 0x5a8   : > { %3582 = vmatpush1.bf16.msra.mxu1 %v5364_v1  ;;  %v5438_v1 = vld [vmem:[#allocation8 + $0x64] ss:$8 sps:$4 sm:$0xff]  }
 0x5a9   : > { %3583 = vmatprep.subr.bf16.mxu1 %v5369_v6  ;;  %v5436_v6 = vld [vmem:[#allocation8 + $0x60] ss:$8 sps:$4 sm:$0xff]   ;;  %4151 = vmatprep.subr.bf16.mxu0 %v5438_v1 }
 0x5aa   : > { %4152 = vmatpush1.bf16.msra.mxu0 %v5436_v6 }
 0x5ac   : > { %3584 = vmatpush1.bf16.msra.mxu1 %v5367_v62  ;;  %v5441_v62 = vld [vmem:[#allocation8 + $0x74] ss:$8 sps:$4 sm:$0xff]  }
 0x5ad   : > { %3585 = vmatprep.subr.bf16.mxu1 %v5372_v9  ;;  %v5439_v9 = vld [vmem:[#allocation8 + $0x70] ss:$8 sps:$4 sm:$0xff]   ;;  %4153 = vmatprep.subr.bf16.mxu0 %v5441_v62 }
 0x5ae   : > { %4154 = vmatpush1.bf16.msra.mxu0 %v5439_v9 }
 0x5b0   : > { %3586 = vmatpush1.bf16.msra.mxu1 %v5370_v39  ;;  %v5444_v39 = vld [vmem:[#allocation8 + $0x84] ss:$8 sps:$4 sm:$0xff]  }
 0x5b1   : > { %3587 = vmatprep.subr.bf16.mxu1 %v5375_v52  ;;  %v5442_v52 = vld [vmem:[#allocation8 + $0x80] ss:$8 sps:$4 sm:$0xff]   ;;  %4155 = vmatprep.subr.bf16.mxu0 %v5444_v39 }
 0x5b2   : > { %4156 = vmatpush1.bf16.msra.mxu0 %v5442_v52  ;;  %v5471_v52 = vld [vmem:[#allocation8 + $0x114] ss:$8 sps:$4 sm:$0xff]  }
 0x5b4   : > { %3588 = vmatpush1.bf16.msra.mxu1 %v5373_v55  ;;  %v5447_v55 = vld [vmem:[#allocation8 + $0x94] ss:$8 sps:$4 sm:$0xff]  }
 0x5b5   : > { %3589 = vmatprep.subr.bf16.mxu1 %v5378_v56  ;;  %v5445_v56 = vld [vmem:[#allocation8 + $0x90] ss:$8 sps:$4 sm:$0xff]   ;;  %4157 = vmatprep.subr.bf16.mxu0 %v5447_v55 }
 0x5b6   : > { %4158 = vmatpush1.bf16.msra.mxu0 %v5445_v56  ;;  %v5469_v55 = vld [vmem:[#allocation8 + $0x110] ss:$8 sps:$4 sm:$0xff]   ;;  %v5474_v56 = vld [vmem:[#allocation8 + $0x124] ss:$8 sps:$4 sm:$0xff]  }
 0x5b8   : > { %3590 = vmatpush1.bf16.msra.mxu1 %v5376_v30  ;;  %v5450_v30 = vld [vmem:[#allocation8 + $0xa4] ss:$8 sps:$4 sm:$0xff]  }
 0x5b9   : > { %3591 = vmatprep.subr.bf16.mxu1 %v5381_v53  ;;  %v5448_v53 = vld [vmem:[#allocation8 + $0xa0] ss:$8 sps:$4 sm:$0xff]   ;;  %4159 = vmatprep.subr.bf16.mxu0 %v5450_v30 }
 0x5ba   : > { %4160 = vmatpush1.bf16.msra.mxu0 %v5448_v53  ;;  %v5472_v30 = vld [vmem:[#allocation8 + $0x120] ss:$8 sps:$4 sm:$0xff]   ;;  %v5477_v53 = vld [vmem:[#allocation8 + $0x134] ss:$8 sps:$4 sm:$0xff]  }
 0x5bc   : > { %3592 = vmatpush1.bf16.msra.mxu1 %v5379_v41  ;;  %v5453_v41 = vld [vmem:[#allocation8 + $0xb4] ss:$8 sps:$4 sm:$0xff]  }
 0x5bd   : > { %3593 = vmatprep.subr.bf16.mxu1 %v5384_v17  ;;  %v5451_v17 = vld [vmem:[#allocation8 + $0xb0] ss:$8 sps:$4 sm:$0xff]   ;;  %4161 = vmatprep.subr.bf16.mxu0 %v5453_v41 }
 0x5be   : > { %4162 = vmatpush1.bf16.msra.mxu0 %v5451_v17  ;;  %v5475_v41 = vld [vmem:[#allocation8 + $0x130] ss:$8 sps:$4 sm:$0xff]   ;;  %v5480_v17 = vld [vmem:[#allocation8 + $0x144] ss:$8 sps:$4 sm:$0xff]  }
 0x5c0   : > { %3594 = vmatpush1.bf16.msra.mxu1 %v5382_v59  ;;  %v5456_v59 = vld [vmem:[#allocation8 + $0xc4] ss:$8 sps:$4 sm:$0xff]  }
 0x5c1   : > { %3595 = vmatprep.subr.bf16.mxu1 %v5387_v28  ;;  %v5454_v28 = vld [vmem:[#allocation8 + $0xc0] ss:$8 sps:$4 sm:$0xff]   ;;  %4163 = vmatprep.subr.bf16.mxu0 %v5456_v59 }
 0x5c2   : > { %4164 = vmatpush1.bf16.msra.mxu0 %v5454_v28  ;;  %v5478_v59 = vld [vmem:[#allocation8 + $0x140] ss:$8 sps:$4 sm:$0xff]   ;;  %v5483_v28 = vld [vmem:[#allocation8 + $0x154] ss:$8 sps:$4 sm:$0xff]  }
 0x5c4   : > { %3596 = vmatpush1.bf16.msra.mxu1 %v5385_v4 }
 0x5c5   : > { %3597 = vmatprep.subr.bf16.mxu1 %v5390_v23 }
 0x5c8   : > { %3598 = vmatpush1.bf16.msra.mxu1 %v5388_v0 }
 0x5c9   : > { %3599 = vmatprep.subr.bf16.mxu1 %v5393_v3 }
 0x5cc   : > { %3600 = vmatpush1.bf16.msra.mxu1 %v5391_v11 }
 0x5cd   : > { %3612 = vmatprep.subr.bf16.mxu1 %v5396_v12 }
 0x5cf   : > { %3602 = vmatmul.mubr.bf16.vlgmr.msra.gmra.mrb[20].mxu1 %v6177_v34  ;;  %v5409_v34 = vld [vmem:[#allocation6 + $0x400] ss:$24 sps:$4 sm:$0xff]  }
 0x5d0   : > { %3613 = vmatpush1.bf16.msra.mxu1 %v5394_v19  ;;  %3644 = vmatprep.mubr.bf16.mxu1 %v5636_v2  ;;  %v6214_v19 = vld [vmem:[%s6261_s4 + $0x8] sm:$0xff] }
 0x5d1   : > { %3614 = vmatprep.subr.bf16.mxu1 %v5399_v20  ;;  %v5459_v20 = vld [vmem:[#allocation8 + $0xd4] ss:$8 sps:$4 sm:$0xff]  }
 0x5d2   : > { %4165 = vmatprep.subr.bf16.mxu0 %v5459_v20 }
 0x5d4   : > { %3615 = vmatpush1.bf16.msra.mxu1 %v5397_v40  ;;  %v5457_v40 = vld [vmem:[#allocation8 + $0xd0] ss:$8 sps:$4 sm:$0xff]  }
 0x5d5   : > { %3616 = vmatprep.subr.bf16.mxu1 %v5402_v15  ;;  %4166 = vmatpush1.bf16.msra.mxu0 %v5457_v40  ;;  %v5460_v15 = vld [vmem:[#allocation8 + $0xe0] ss:$8 sps:$4 sm:$0xff]  }
 0x5d8   : > { %3617 = vmatpush1.bf16.msra.mxu1 %v5400_v21  ;;  %v5465_v21 = vld [vmem:[#allocation8 + $0xf4] ss:$8 sps:$4 sm:$0xff]  }
 0x5d9   : > { %3618 = vmatprep.subr.bf16.mxu1 %v5405_v24  ;;  %v5463_v24 = vld [vmem:[#allocation8 + $0xf0] ss:$8 sps:$4 sm:$0xff]  }
 0x5dc   : > { %3619 = vmatpush1.bf16.msra.mxu1 %v5403_v26  ;;  %v5468_v26 = vld [vmem:[#allocation8 + $0x104] ss:$8 sps:$4 sm:$0xff]  }
 0x5dd   : > { %3620 = vmatprep.subr.bf16.mxu1 %v5408_v61  ;;  %v2673_v61 = vld [vmem:[%s6267_s10] sm:$0x7] }
 0x5e0   : > { %3621 = vmatpush1.bf16.msra.mxu1 %v5406_v36 }
 0x5e1   : > { %3622 = vmatprep.subr.bf16.mxu1 %v5411_v37 }
 0x5e4   : > { %3623 = vmatpush1.bf16.msra.mxu1 %v5409_v34 }
 0x5e5   : > { %3624 = vmatprep.subr.bf16.mxu1 %v5414_v25  ;;  %v3823_v25 = vrot.slane %v2673_v61, %v5872_v7 }
 0x5e8   : > { %3625 = vmatpush1.bf16.msra.mxu1 %v5412_v29 }
 0x5e9   : > { %3626 = vmatprep.subr.bf16.mxu1 %v5417_v14 }
 0x5ec   : > { %3627 = vmatpush1.bf16.msra.mxu1 %v5415_v54  ;;  %v3827_v54 = vrot.slane %v2673_v61, %v5875_v8 }
 0x5ef   : > { %3645 = vmatmul.mubr.bf16.vlgmr.msra.gmra.mrb[20].mxu1 %v6185_v60 }
 0x5f0   : > { %3725 = vmatprep.mubr.f32.mxu1 %v5638_v42 }
 0x662   : > { %v6196_v49 = vpop.f32.mrb[16].mxu1  ;;  %v6198_v60 = vpop.f32.mrb[12].mxu0 }
 0x663   : > { %v6200_v13 = vpop.f32.mrb[17].mxu1  ;;  %v3562_v43 = vpop.f32.mrb[13].mxu0  ;;  %v3657_v8 = vmul.f32 %v6198_v60, %v6100_v27 }
 0x664   : > { %v6202_v46 = vpop.f32.mrb[18].mxu1  ;;  %v6204_v48 = vpop.f32.mrb[14].mxu0  ;;  %v3656_v36 = vmul.f32 %v6200_v13, %v6100_v27 }
 0x665   : > { %v6206_v44 = vpop.f32.mrb[19].mxu1  ;;  %v3566_v45 = vpop.f32.mrb[15].mxu0  ;;  %v3658_v58 = vmul.f32 %v6202_v46, %v6082_v47  ;;  %v3660_v35 = vmul.f32 %v6204_v48, %v6082_v47  ;;  %v5466_v48 = vld [vmem:[#allocation8 + $0x100] ss:$8 sps:$4 sm:$0xff]  }
 0x666   : > { %v4883_v22 = vpack.c.bf16 %v3566_v45, %v3562_v43  ;;  %v3659_v31 = vmul.f32 %v6206_v44, %v6082_v47 }
 0x6c2   : > { %v3646_v4 = vpop.f32.mrb[20].mxu1 }
 0x6c3   : > { %v3648_v23 = vpop.f32.mrb[21].mxu1 }
 0x6c4   : > { %v3650_v0 = vpop.f32.mrb[22].mxu1 }
 0x6c5   : > { %v4881_v3 = vpack.c.bf16 %v3650_v0, %v3646_v4  ;;  %v3652_v11 = vpop.f32.mrb[23].mxu1  ;;  %v5481_v4 = vld [vmem:[#allocation8 + $0x150] ss:$8 sps:$4 sm:$0xff]   ;;  %v5489_v0 = vld [vmem:[#allocation8 + $0x174] ss:$8 sps:$4 sm:$0xff]  }
 0x6c6   : > { %v4885_v12 = vpack.c.bf16 %v3652_v11, %v3648_v23  ;;  %v5486_v23 = vld [vmem:[#allocation8 + $0x164] ss:$8 sps:$4 sm:$0xff]  }
 0x6c7   : > { %4882 = vmatprep.subr.bf16.mxu1 %v4881_v3  ;;  %v5487_v3 = vld [vmem:[#allocation8 + $0x170] ss:$8 sps:$4 sm:$0xff]  }
 0x6c8   : > { %4884 = vmatpush1.bf16.msra.mxu1 %v4883_v22 }
 0x6c9   : > { %4886 = vmatprep.subr.bf16.mxu1 %v4885_v12 }
 0x6cb   : > { %4761 = vmatmul.mubr.msk.f32.vlgmr.msra.gmra.mrb[24].mxu1 %vm1018_vm0, %v6148_v51 }
 0x6cc   : > { %4888 = vmatpush3.bf16.msra.mxu1 %v4885_v12  ;;  %3731 = vmatprep.mubr.f32.mxu1 %v5638_v42  ;;  %v5462_v42 = vld [vmem:[#allocation8 + $0xe4] ss:$8 sps:$4 sm:$0xff]  }
 0x6cd   : > { %4167 = vmatprep.subr.bf16.mxu0 %v5462_v42 }
 0x6ce   : > { %4168 = vmatpush1.bf16.msra.mxu0 %v5460_v15 }
 0x6cf   : > { %4762 = vmatmul.mubr.msk.f32.gmra.mrb[26].mxu1 %vm1018_vm0, %v6214_v19  ;;  %4169 = vmatprep.subr.bf16.mxu0 %v5465_v21 }
 0x6d0   : > { %4855 = vmatprep.mubr.msk.f32.mxu1 %vm1018_vm0, %v6148_v51 }
 0x6d2   : > { %4170 = vmatpush1.bf16.msra.mxu0 %v5463_v24  ;;  %v4815_v24 = vld [vmem:[%s6269_s12] ss:$0 sm:$0xff] }
 0x6d3   : > { %4856 = vmatmul.mubr.msk.f32.vlgmr.msra.gmra.mrb[28].mxu1 %vm1018_vm0, %v6214_v19  ;;  %4182 = vmatprep.subr.bf16.mxu0 %v5468_v26 }
 0x6d4   : > { %4862 = vmatprep.mubr.msk.f32.mxu1 %vm1018_vm0, %v6148_v51  ;;  %v3655_v51 = vmul.f32 %v6196_v49, %v6100_v27  ;;  %v3831_v49 = vrot.slane %v2673_v61, %v5886_v16 }
 0x79e   : > { %v3727_v37 = vpop.f32.mrb[24].mxu1 }
 0x79f   : > { %v3813_v34 = vadd.f32 %v3727_v37, %v3655_v51  ;;  %v3729_v29 = vpop.f32.mrb[25].mxu1 }
 0x7a0   : > { %v3814_v14 = vadd.f32 %v3729_v29, %v3656_v36 }
 0x7a1   : > { %v3835_v63 = vadd.f32 %v3823_v25, %v3813_v34 }
 0x7a2   : > { %v3733_v18 = vpop.f32.mrb[26].mxu1  ;;  %v3836_v32 = vadd.f32 %v3827_v54, %v3814_v14 }
 0x7a3   : > { %v3816_v33 = vadd.f32 %v3733_v18, %v3658_v58  ;;  %v3735_v10 = vpop.f32.mrb[27].mxu1  ;;  %v3841_v43 = vmax.f32 %v3835_v63, 0.0 }
 0x7a4   : > { %v3817_v5 = vadd.f32 %v3735_v10, %v3659_v31  ;;  %v3842_v45 = vmax.f32 %v3836_v32, 0.0 }
 0x7a5   : > { %v3838_v7 = vadd.f32 %v3823_v25, %v3816_v33 }
 0x7a6   : > { %v3839_v38 = vadd.f32 %v3827_v54, %v3817_v5  ;;  %v4857_v13 = vpop.f32.mrb[28].mxu1 }
 0x7a7   : > { %v3844_v57 = vmax.f32 %v3838_v7, 0.0  ;;  %v3818_v46 = vadd.f32 %v4857_v13, %v3660_v35  ;;  %v3804_v44 = vpop.f32.mrb[29].mxu1 }
 0x7a8   : > { %v3845_v22 = vmax.f32 %v3839_v38, 0.0  ;;  %v3815_v50 = vadd.f32 %v3804_v44, %v3657_v8 }
 0x7a9   : > { %v3896_v1 = vpack.c.bf16 %v3844_v57, %v3841_v43  ;;  %v3840_v6 = vadd.f32 %v3831_v49, %v3818_v46 }
 0x7aa   : > { %v3837_v62 = vadd.f32 %v3831_v49, %v3815_v50  ;;  %v3897_v9 = vpack.c.bf16 %v3845_v22, %v3842_v45 }
 0x7ab   : > { %v3846_v39 = vmax.f32 %v3840_v6, 0.0 }
 0x7ac   : > { %v3843_v16 = vmax.f32 %v3837_v62, 0.0  ;;  %4171 = vmatprep.mubr.bf16.mxu0 %v3897_v9 }
 0x7ad   : > { %4172 = vmatmul.mubr.bf16.vlgmr.msra.gmra.mrb[16].mxu0 %v3896_v1 }
 0x7ae   : > { %v3898_v60 = vpack.c.bf16 %v3846_v39, %v3843_v16  ;;  %4183 = vmatpush1.bf16.msra.mxu0 %v5466_v48  ;;  %4214 = vmatprep.mubr.bf16.mxu0 %v5636_v2  ;;  %v5484_v2 = vld [vmem:[#allocation8 + $0x160] ss:$8 sps:$4 sm:$0xff]  }
 0x7af   : > { %4184 = vmatprep.subr.bf16.mxu0 %v5471_v52 }
 0x7b2   : > { %4185 = vmatpush1.bf16.msra.mxu0 %v5469_v55 }
 0x7b3   : > { %4186 = vmatprep.subr.bf16.mxu0 %v5474_v56 }
 0x7b6   : > { %4187 = vmatpush1.bf16.msra.mxu0 %v5472_v30 }
 0x7b7   : > { %4188 = vmatprep.subr.bf16.mxu0 %v5477_v53 }
 0x7ba   : > { %4189 = vmatpush1.bf16.msra.mxu0 %v5475_v41 }
 0x7bb   : > { %4190 = vmatprep.subr.bf16.mxu0 %v5480_v17 }
 0x7be   : > { %4191 = vmatpush1.bf16.msra.mxu0 %v5478_v59 }
 0x7bf   : > { %4192 = vmatprep.subr.bf16.mxu0 %v5483_v28 }
 0x7c2   : > { %4193 = vmatpush1.bf16.msra.mxu0 %v5481_v4 }
 0x7c3   : > { %4194 = vmatprep.subr.bf16.mxu0 %v5486_v23 }
 0x7c6   : > { %4195 = vmatpush1.bf16.msra.mxu0 %v5484_v2 }
 0x7c7   : > { %4196 = vmatprep.subr.bf16.mxu0 %v5489_v0 }
 0x7ca   : > { %4197 = vmatpush1.bf16.msra.mxu0 %v5487_v3 }
 0x7cd   : > { %4215 = vmatmul.mubr.bf16.vlgmr.msra.gmra.mrb[16].mxu0 %v3898_v60 }
 0x8a0   : > { %v4216_v11 = vpop.f32.mrb[16].mxu0 }
 0x8a1   : > { %v4218_v12 = vpop.f32.mrb[17].mxu0  ;;  %v4225_v21 = vmul.f32 %v4216_v11, %v6100_v27 }
 0x8a2   : > { %v4220_v20 = vpop.f32.mrb[18].mxu0 }
 0x8a3   : > { %v4222_v40 = vpop.f32.mrb[19].mxu0  ;;  %v4226_v15 = vmul.f32 %v4220_v20, %v6082_v47 }
 0x8a4   : > { %v4889_v42 = vpack.c.bf16 %v4222_v40, %v4218_v12 }
 0x8a6   : > { %4890 = vmatprep.subr.bf16.mxu1 %v4889_v42 }
 0x8a7   : > { %4892 = vmatpush3.bf16.msra.mxu1 %v4889_v42 }
 0x8aa   : > { %4863 = vmatmul.mubr.msk.f32.vlgmr.msra.gmra.mrb[30].mxu1 %vm1018_vm0, %v6214_v19 }
 0x97d   : > { %v4864_v26 = vpop.f32.mrb[30].mxu1 }
 0x97e   : > { %v4303_v61 = vadd.f32 %v4864_v26, %v4226_v15  ;;  %v4293_v51 = vpop.f32.mrb[31].mxu1 }
 0x97f   : > { %v4302_v36 = vadd.f32 %v4293_v51, %v4225_v21 }
 0x980   : > { %v4311_v37 = vadd.f32 %v4815_v24, %v4303_v61 }
 0x981   : > { %v4310_v34 = vadd.f32 %v4815_v24, %v4302_v36 }
 0x982   : > { %4313 = vst [vmem:[%s538_s16 + $0x8] sm:$0xff] %v4311_v37 }
 0x983   : > { %4312 = vst [vmem:[%s538_s16] sm:$0xff] %v4310_v34 }
 0x984 PF: > { %s28_s29 = sadd.s32 1, %s5625_s29  }
 0x985   : > { %p25_p12 = scmp.ge.s32.totalorder %s28_s29, 4  }
 0x987   :  { %27 = sbr.rel (!%p25_p12) target bundleno = 6 (0x6), region = 132 }
 0x98e   :  { %4351 = vsyncpa [#allocation3], 1 }
 0x98f   :  { %4353 = vsyncpa [#allocation3 + $0x1], 1 }
 0x990   :  { %4354 = vsyncpa [#allocation7], 1 }
 0x991   :  { %4355 = vsyncpa [#allocation4], 1 }
 0x992   :  { %4357 = vsyncpa [#allocation4 + $0x1], 1 }

</bundles_post_ra>
